<compile_context>
chip_gen: v7x
topology: tpu7x:2x2x1
jax: 0.10.0
libtpu: 0.0.40
codegen_flags: <defaults>
</compile_context>

<pallas_src>
import functools
import math

import jax
import jax.numpy as jnp
from jax import lax
from jax.experimental import pallas as pl
from jax.experimental.pallas import tpu as pltpu


# ---------------------------------------------------------------------------
# Activation (trace-time selection; applied inside the kernel and in the ref)
# ---------------------------------------------------------------------------
def _apply_act(v, act):
    if act == "gelu":
        return jax.nn.gelu(v, approximate=True)
    if act == "relu":
        return jnp.maximum(v, 0.0)
    if act in ("none", None, "identity"):
        return v
    raise ValueError(f"unsupported act: {act!r}")


# ---------------------------------------------------------------------------
# Fused Pallas kernel: conv3x3 -> act -> conv3x3, one (TILE_H x W) tile / step
# ---------------------------------------------------------------------------
def _convmlp_fused_kernel(x_ref, w1_ref, b1_ref, w2_ref, b2_ref, o_ref, h1_ref,
                          *, tile_h, w_out, cin, hidden, act):
    """x_ref : (1, H+4, W+2, Cin)  per-batch input, zero-padded (2,2)/(1,1)
       w1_ref: (9*Cin, hidden)     conv1 im2col weights (bf16)
       b1_ref: (1, hidden)         conv1 bias (f32)
       w2_ref: (9*hidden, Cout)    conv2 im2col weights (bf16)
       b2_ref: (1, Cout)           conv2 bias (f32)
       o_ref : (1, TILE_H*W, Cout) output slab for this row tile
       h1_ref: (TILE_H+2, W+2, hidden) f32 scratch, hidden activation + halo
    """
    th2 = tile_h + 2
    m1 = th2 * w_out
    m2 = tile_h * w_out
    row0 = pl.multiple_of(pl.program_id(1) * tile_h, tile_h)

    # ---- conv1 + bias + act on rows row0-1 .. row0+tile_h (1-row halo) -----
    # conv1 output row R, tap kh reads x_pad2 row R + 1 + kh; for the halo
    # start R = row0 - 1 that is x_pad2 row row0 + kh.
    taps1 = []
    for kh in range(3):
        for kw in range(3):
            tap = x_ref[0, pl.ds(row0 + kh, th2), pl.ds(kw, w_out), :]
            taps1.append(tap.reshape(m1, cin).astype(w1_ref.dtype))
    patches1 = jnp.concatenate(taps1, axis=-1)                  # (m1, 9*Cin)
    acc1 = jnp.dot(patches1, w1_ref[...], preferred_element_type=jnp.float32)
    acc1 = _apply_act(acc1 + b1_ref[...].astype(jnp.float32), act)

    # Halo rows outside [0, H) are the hidden activation's zero padding, not
    # conv outputs: mask them (branch-free, negligible VALU work).
    flat = lax.broadcasted_iota(jnp.int32, (m1, 1), 0)
    keep = ((pl.program_id(1) != 0) | (flat >= w_out)) & \
           ((pl.program_id(1) != pl.num_programs(1) - 1) |
            (flat < (th2 - 1) * w_out))
    acc1 = jnp.where(keep, acc1, 0.0)

    # Write the hidden tile (stays in VMEM, never touches HBM): interior
    # columns get the activation, border columns are the zero W-padding.
    zero_col = jnp.zeros((th2, hidden), dtype=h1_ref.dtype)
    h1_ref[:, 0, :] = zero_col
    h1_ref[:, w_out + 1, :] = zero_col
    h1_ref[:, pl.ds(1, w_out), :] = acc1.reshape(th2, w_out, hidden)

    # ---- conv2 + bias over the VMEM-resident hidden tile -------------------
    taps2 = []
    for kh in range(3):
        for kw in range(3):
            tap = h1_ref[pl.ds(kh, tile_h), pl.ds(kw, w_out), :]
            taps2.append(tap.reshape(m2, hidden).astype(w2_ref.dtype))
    patches2 = jnp.concatenate(taps2, axis=-1)                  # (m2, 9*hidden)
    acc2 = jnp.dot(patches2, w2_ref[...], preferred_element_type=jnp.float32)
    acc2 = acc2 + b2_ref[...].astype(jnp.float32)
    o_ref[0] = acc2.astype(o_ref.dtype)


def _pick_tile_h(H, W):
    best = None
    for t in (8, 16, 32, 64):
        if H % t == 0 and (t * W) % 8 == 0 and t * W <= 1024:
            best = t
    return best if best is not None else H


def convmlp_forward_pallas(x_pad2, w1_flat, b1, w2_flat, b2, *, act="gelu",
                           tile_h=None):
    """x_pad2: (N, H+4, W+2, Cin) NHWC input, zero-padded by (2,2) rows / (1,1) cols
       w1_flat: (9*Cin, hidden), w2_flat: (9*hidden, Cout)  (HWIO flattened, bf16)
       b1: (1, hidden), b2: (1, Cout)
       returns: (N, H*W, Cout)
    """
    n, hp4, wp2, cin = x_pad2.shape
    H, W = hp4 - 4, wp2 - 2
    k9cin, hidden = w1_flat.shape
    k9hid, cout = w2_flat.shape
    assert k9cin == 9 * cin, (k9cin, cin)
    assert k9hid == 9 * hidden, (k9hid, hidden)
    if tile_h is None or H % tile_h != 0 or (tile_h < H and (tile_h * W) % 8 != 0):
        tile_h = _pick_tile_h(H, W)
    num_tiles = H // tile_h

    kernel = functools.partial(_convmlp_fused_kernel, tile_h=tile_h, w_out=W,
                               cin=cin, hidden=hidden, act=act)
    return pl.pallas_call(
        kernel,
        out_shape=jax.ShapeDtypeStruct((n, H * W, cout), x_pad2.dtype),
        grid_spec=pltpu.PrefetchScalarGridSpec(
            num_scalar_prefetch=0,
            grid=(n, num_tiles),
            in_specs=[
                # full padded image per batch; constant along the row axis so
                # Pallas keeps it VMEM-resident (no re-DMA) across row tiles.
                pl.BlockSpec((1, hp4, wp2, cin), lambda i, j: (i, 0, 0, 0)),
                pl.BlockSpec((k9cin, hidden), lambda i, j: (0, 0)),
                pl.BlockSpec((1, hidden), lambda i, j: (0, 0)),
                pl.BlockSpec((k9hid, cout), lambda i, j: (0, 0)),
                pl.BlockSpec((1, cout), lambda i, j: (0, 0)),
            ],
            out_specs=pl.BlockSpec((1, tile_h * W, cout), lambda i, j: (i, j, 0)),
            scratch_shapes=[pltpu.VMEM((tile_h + 2, W + 2, hidden), jnp.float32)],
        ),
        compiler_params=pltpu.CompilerParams(
            dimension_semantics=("parallel", "parallel")),
    )(x_pad2, w1_flat, b1, w2_flat, b2)


# ---------------------------------------------------------------------------
# Module wrapper (deterministic in-script parameter init, PyTorch-style bounds)
# ---------------------------------------------------------------------------
class ConvMLPPallas:
    """Pallas port of PUT.py ConvMLP forward: x (B,T,C) -> conv3x3 -> act ->
    conv3x3 -> (B,T,C).  Dropout is eval-mode identity."""

    def __init__(self, n_embd, mlp_hidden_times, act="gelu", resid_pdrop=0.0,
                 spatial_size=None, *, tile_h=None, key=None,
                 dtype=jnp.float32, mxu_dtype=jnp.bfloat16):
        self.n_embd = n_embd
        self.hidden = mlp_hidden_times * n_embd
        self.act = act
        self.resid_pdrop = resid_pdrop
        self.spatial_size = spatial_size
        self.tile_h = tile_h
        if key is None:
            key = jax.random.PRNGKey(0)
        k1, k2, k3, k4 = jax.random.split(key, 4)
        # PyTorch Conv2d default init: U(-1/sqrt(fan_in), 1/sqrt(fan_in)), fan_in = Cin*3*3
        bound1 = 1.0 / math.sqrt(n_embd * 9)
        self.w1_hwio = jax.random.uniform(k1, (3, 3, n_embd, self.hidden), dtype, -bound1, bound1)
        self.b1 = jax.random.uniform(k2, (1, self.hidden), dtype, -bound1, bound1)
        bound2 = 1.0 / math.sqrt(self.hidden * 9)
        self.w2_hwio = jax.random.uniform(k3, (3, 3, self.hidden, n_embd), dtype, -bound2, bound2)
        self.b2 = jax.random.uniform(k4, (1, n_embd), dtype, -bound2, bound2)
        # MXU-ready layouts: single contiguous (9*Cin, Cout) tiles, bf16 inputs.
        self.w1_flat = self.w1_hwio.reshape(9 * n_embd, self.hidden).astype(mxu_dtype)
        self.w2_flat = self.w2_hwio.reshape(9 * self.hidden, n_embd).astype(mxu_dtype)

    def _hw(self, T):
        if self.spatial_size is None:
            h = int(math.sqrt(T))
            return h, h
        return self.spatial_size[0], self.spatial_size[1]

    def __call__(self, x):
        B, T, C = x.shape
        h, w = self._hw(T)
        # torch: view(B,h,w,C).permute(0,3,1,2) -> NCHW; here we keep NHWC
        # (channels on TPU lanes) and use HWIO weights -> same math.
        x_nhwc = x.reshape(B, h, w, C)
        # pad by 2 rows / 1 col so the fused kernel's 1-row-halo conv1 reads
        # never go out of bounds.
        x_pad2 = jnp.pad(x_nhwc, ((0, 0), (2, 2), (1, 1), (0, 0)))
        y = convmlp_forward_pallas(x_pad2, self.w1_flat, self.b1,
                                   self.w2_flat, self.b2,
                                   act=self.act, tile_h=self.tile_h)
        # y is already (B, h*w, n_embd) == (B, T, C)
        # TODO(synk): nn.Dropout(resid_pdrop) is identity in eval mode; training-mode dropout not implemented.
        return y


# ---------------------------------------------------------------------------
# Pure-JAX reference (mirrors the PyTorch forward) for correctness checking
# ---------------------------------------------------------------------------
def convmlp_ref(mod, x):
    B, T, C = x.shape
    h, w = mod._hw(T)
    xi = x.reshape(B, h, w, C)
    y1 = lax.conv_general_dilated(
        xi, mod.w1_hwio, (1, 1), "SAME",
        dimension_numbers=("NHWC", "HWIO", "NHWC")) + mod.b1[0]
    y1 = _apply_act(y1, mod.act)
    y2 = lax.conv_general_dilated(
        y1, mod.w2_hwio, (1, 1), "SAME",
        dimension_numbers=("NHWC", "HWIO", "NHWC")) + mod.b2[0]
    return y2.reshape(B, h * w, C)


if __name__ == "__main__":
    key = jax.random.PRNGKey(0)
    kx1, kp1, kx2, kp2 = jax.random.split(key, 4)

    # Config 1: n_embd=32, hidden=4*32=128 (lane-dense hidden), 16x16 spatial,
    # tile_h=8 -> 2 row tiles per batch (exercises multi-tile halo indexing).
    B, n_embd, times, h = 2, 32, 4, 16
    x = jax.random.normal(kx1, (B, h * h, n_embd), jnp.float32)      # (2, 256, 32)
    mod = ConvMLPPallas(n_embd, times, act="gelu", resid_pdrop=0.1,
                        key=kp1, tile_h=8)
    y = jax.block_until_ready(mod(x))
    assert y.shape == (B, h * h, n_embd), y.shape
    y_ref = convmlp_ref(mod, x)
    err = float(jnp.max(jnp.abs(y - y_ref)))
    assert jnp.allclose(y, y_ref, atol=3e-2, rtol=3e-2), \
        f"config1 mismatch (max abs err {err})"

    # Config 2: relu act, small channel counts, auto tile (single-tile path,
    # non-128 lane widths everywhere).
    B2, n_embd2, times2, h2 = 2, 8, 4, 8
    x2 = jax.random.normal(kx2, (B2, h2 * h2, n_embd2), jnp.float32)  # (2, 64, 8)
    mod2 = ConvMLPPallas(n_embd2, times2, act="relu", resid_pdrop=0.0, key=kp2)
    y2 = jax.block_until_ready(mod2(x2))
    assert y2.shape == (B2, h2 * h2, n_embd2), y2.shape
    y2_ref = convmlp_ref(mod2, x2)
    err2 = float(jnp.max(jnp.abs(y2 - y2_ref)))
    assert jnp.allclose(y2, y2_ref, atol=3e-2, rtol=3e-2), \
        f"config2 mismatch (max abs err {err2})"

    print("KERNEL_OK")
</pallas_src>

<mosaic_0001>
module attributes {stable_mosaic.version = 11 : i64} {
  func.func @_convmlp_fused_kernel(%arg0: i32, %arg1: i32, %arg2: memref<1x20x18x32xf32, #tpu.memory_space<vmem>>, %arg3: memref<288x128xbf16, #tpu.memory_space<vmem>>, %arg4: memref<1x128xf32, #tpu.memory_space<vmem>>, %arg5: memref<1152x32xbf16, #tpu.memory_space<vmem>>, %arg6: memref<1x32xf32, #tpu.memory_space<vmem>>, %arg7: memref<1x128x32xf32, #tpu.memory_space<vmem>>, %arg8: memref<10x18x128xf32, #tpu.memory_space<vmem>>) attributes {dimension_semantics = [#tpu.dimension_semantics<parallel>, #tpu.dimension_semantics<parallel>], iteration_bounds = array<i64: 2, 2>, scalar_prefetch = 0 : i64, scratch_operands = 1 : i64, tpu.core_type = #tpu.core_type<tc>, window_params = [{transform_indices = @transform_0, window_bounds = array<i64: 1, 20, 18, 32>}, {pipeline_mode = #tpu.pipeline_mode<synchronous>, transform_indices = @transform_1, window_bounds = array<i64: 288, 128>}, {pipeline_mode = #tpu.pipeline_mode<synchronous>, transform_indices = @transform_2, window_bounds = array<i64: 1, 128>}, {pipeline_mode = #tpu.pipeline_mode<synchronous>, transform_indices = @transform_3, window_bounds = array<i64: 1152, 32>}, {pipeline_mode = #tpu.pipeline_mode<synchronous>, transform_indices = @transform_4, window_bounds = array<i64: 1, 32>}, {transform_indices = @transform_5, window_bounds = array<i64: 1, 128, 32>}]} {
    %c8_i32 = arith.constant 8 : i32
    %0 = arith.muli %arg1, %c8_i32 : i32
    %1 = tpu.assume_multiple %0, 8 : i32
    %c0_i32 = arith.constant 0 : i32
    %2 = arith.addi %1, %c0_i32 : i32
    %c0 = arith.constant 0 : index
    %3 = arith.index_cast %2 : i32 to index
    %c0_0 = arith.constant 0 : index
    %c0_1 = arith.constant 0 : index
    %4 = vector.load %arg2[%c0, %3, %c0_0, %c0_1] : memref<1x20x18x32xf32, #tpu.memory_space<vmem>>, vector<1x10x16x32xf32>
    %5 = vector.shape_cast %4 : vector<1x10x16x32xf32> to vector<10x16x32xf32>
    %6 = vector.shape_cast %5 : vector<10x16x32xf32> to vector<160x32xf32>
    %7 = arith.truncf %6 : vector<160x32xf32> to vector<160x32xbf16>
    %c0_i32_2 = arith.constant 0 : i32
    %8 = arith.addi %1, %c0_i32_2 : i32
    %c0_3 = arith.constant 0 : index
    %9 = arith.index_cast %8 : i32 to index
    %c1 = arith.constant 1 : index
    %c0_4 = arith.constant 0 : index
    %10 = vector.load %arg2[%c0_3, %9, %c1, %c0_4] : memref<1x20x18x32xf32, #tpu.memory_space<vmem>>, vector<1x10x16x32xf32>
    %11 = vector.shape_cast %10 : vector<1x10x16x32xf32> to vector<10x16x32xf32>
    %12 = vector.shape_cast %11 : vector<10x16x32xf32> to vector<160x32xf32>
    %13 = arith.truncf %12 : vector<160x32xf32> to vector<160x32xbf16>
    %c0_i32_5 = arith.constant 0 : i32
    %14 = arith.addi %1, %c0_i32_5 : i32
    %c0_6 = arith.constant 0 : index
    %15 = arith.index_cast %14 : i32 to index
    %c2 = arith.constant 2 : index
    %c0_7 = arith.constant 0 : index
    %16 = vector.load %arg2[%c0_6, %15, %c2, %c0_7] : memref<1x20x18x32xf32, #tpu.memory_space<vmem>>, vector<1x10x16x32xf32>
    %17 = vector.shape_cast %16 : vector<1x10x16x32xf32> to vector<10x16x32xf32>
    %18 = vector.shape_cast %17 : vector<10x16x32xf32> to vector<160x32xf32>
    %19 = arith.truncf %18 : vector<160x32xf32> to vector<160x32xbf16>
    %c1_i32 = arith.constant 1 : i32
    %20 = arith.addi %1, %c1_i32 : i32
    %c0_8 = arith.constant 0 : index
    %21 = arith.index_cast %20 : i32 to index
    %c0_9 = arith.constant 0 : index
    %c0_10 = arith.constant 0 : index
    %22 = vector.load %arg2[%c0_8, %21, %c0_9, %c0_10] : memref<1x20x18x32xf32, #tpu.memory_space<vmem>>, vector<1x10x16x32xf32>
    %23 = vector.shape_cast %22 : vector<1x10x16x32xf32> to vector<10x16x32xf32>
    %24 = vector.shape_cast %23 : vector<10x16x32xf32> to vector<160x32xf32>
    %25 = arith.truncf %24 : vector<160x32xf32> to vector<160x32xbf16>
    %c1_i32_11 = arith.constant 1 : i32
    %26 = arith.addi %1, %c1_i32_11 : i32
    %c0_12 = arith.constant 0 : index
    %27 = arith.index_cast %26 : i32 to index
    %c1_13 = arith.constant 1 : index
    %c0_14 = arith.constant 0 : index
    %28 = vector.load %arg2[%c0_12, %27, %c1_13, %c0_14] : memref<1x20x18x32xf32, #tpu.memory_space<vmem>>, vector<1x10x16x32xf32>
    %29 = vector.shape_cast %28 : vector<1x10x16x32xf32> to vector<10x16x32xf32>
    %30 = vector.shape_cast %29 : vector<10x16x32xf32> to vector<160x32xf32>
    %31 = arith.truncf %30 : vector<160x32xf32> to vector<160x32xbf16>
    %c1_i32_15 = arith.constant 1 : i32
    %32 = arith.addi %1, %c1_i32_15 : i32
    %c0_16 = arith.constant 0 : index
    %33 = arith.index_cast %32 : i32 to index
    %c2_17 = arith.constant 2 : index
    %c0_18 = arith.constant 0 : index
    %34 = vector.load %arg2[%c0_16, %33, %c2_17, %c0_18] : memref<1x20x18x32xf32, #tpu.memory_space<vmem>>, vector<1x10x16x32xf32>
    %35 = vector.shape_cast %34 : vector<1x10x16x32xf32> to vector<10x16x32xf32>
    %36 = vector.shape_cast %35 : vector<10x16x32xf32> to vector<160x32xf32>
    %37 = arith.truncf %36 : vector<160x32xf32> to vector<160x32xbf16>
    %c2_i32 = arith.constant 2 : i32
    %38 = arith.addi %1, %c2_i32 : i32
    %c0_19 = arith.constant 0 : index
    %39 = arith.index_cast %38 : i32 to index
    %c0_20 = arith.constant 0 : index
    %c0_21 = arith.constant 0 : index
    %40 = vector.load %arg2[%c0_19, %39, %c0_20, %c0_21] : memref<1x20x18x32xf32, #tpu.memory_space<vmem>>, vector<1x10x16x32xf32>
    %41 = vector.shape_cast %40 : vector<1x10x16x32xf32> to vector<10x16x32xf32>
    %42 = vector.shape_cast %41 : vector<10x16x32xf32> to vector<160x32xf32>
    %43 = arith.truncf %42 : vector<160x32xf32> to vector<160x32xbf16>
    %c2_i32_22 = arith.constant 2 : i32
    %44 = arith.addi %1, %c2_i32_22 : i32
    %c0_23 = arith.constant 0 : index
    %45 = arith.index_cast %44 : i32 to index
    %c1_24 = arith.constant 1 : index
    %c0_25 = arith.constant 0 : index
    %46 = vector.load %arg2[%c0_23, %45, %c1_24, %c0_25] : memref<1x20x18x32xf32, #tpu.memory_space<vmem>>, vector<1x10x16x32xf32>
    %47 = vector.shape_cast %46 : vector<1x10x16x32xf32> to vector<10x16x32xf32>
    %48 = vector.shape_cast %47 : vector<10x16x32xf32> to vector<160x32xf32>
    %49 = arith.truncf %48 : vector<160x32xf32> to vector<160x32xbf16>
    %c2_i32_26 = arith.constant 2 : i32
    %50 = arith.addi %1, %c2_i32_26 : i32
    %c0_27 = arith.constant 0 : index
    %51 = arith.index_cast %50 : i32 to index
    %c2_28 = arith.constant 2 : index
    %c0_29 = arith.constant 0 : index
    %52 = vector.load %arg2[%c0_27, %51, %c2_28, %c0_29] : memref<1x20x18x32xf32, #tpu.memory_space<vmem>>, vector<1x10x16x32xf32>
    %53 = vector.shape_cast %52 : vector<1x10x16x32xf32> to vector<10x16x32xf32>
    %54 = vector.shape_cast %53 : vector<10x16x32xf32> to vector<160x32xf32>
    %55 = arith.truncf %54 : vector<160x32xf32> to vector<160x32xbf16>
    %56 = tpu.concatenate %7, %13, %19, %25, %31, %37, %43, %49, %55 in 1 : vector<160x32xbf16>, vector<160x32xbf16>, vector<160x32xbf16>, vector<160x32xbf16>, vector<160x32xbf16>, vector<160x32xbf16>, vector<160x32xbf16>, vector<160x32xbf16>, vector<160x32xbf16> -> vector<160x288xbf16>
    %c0_30 = arith.constant 0 : index
    %c0_31 = arith.constant 0 : index
    %57 = vector.load %arg3[%c0_30, %c0_31] : memref<288x128xbf16, #tpu.memory_space<vmem>>, vector<288x128xbf16>
    %cst = arith.constant dense<0.000000e+00> : vector<160x128xf32>
    %58 = tpu.matmul %56, %57, %cst {dimension_numbers = #tpu.dot_dimension_numbers<[1], [0], [0], [1], [0, 0, 1, 1], [], []>} : vector<160x288xbf16>, vector<288x128xbf16>, vector<160x128xf32> -> vector<160x128xf32>
    %c0_32 = arith.constant 0 : index
    %c0_33 = arith.constant 0 : index
    %59 = vector.load %arg4[%c0_32, %c0_33] : memref<1x128xf32, #tpu.memory_space<vmem>>, vector<1x128xf32>
    %60 = vector.broadcast %59 : vector<1x128xf32> to vector<160x128xf32>
    %61 = arith.addf %58, %60 : vector<160x128xf32>
    %62 = arith.mulf %61, %61 : vector<160x128xf32>
    %63 = arith.mulf %61, %62 : vector<160x128xf32>
    %cst_34 = arith.constant 4.471500e-02 : f32
    %64 = vector.broadcast %cst_34 : f32 to vector<160x128xf32>
    %65 = arith.mulf %64, %63 : vector<160x128xf32>
    %66 = arith.addf %61, %65 : vector<160x128xf32>
    %cst_35 = arith.constant 0.797884583 : f32
    %67 = vector.broadcast %cst_35 : f32 to vector<160x128xf32>
    %68 = arith.mulf %67, %66 : vector<160x128xf32>
    %69 = math.tanh %68 : vector<160x128xf32>
    %cst_36 = arith.constant 1.000000e+00 : f32
    %70 = vector.broadcast %cst_36 : f32 to vector<160x128xf32>
    %71 = arith.addf %70, %69 : vector<160x128xf32>
    %cst_37 = arith.constant 5.000000e-01 : f32
    %72 = vector.broadcast %cst_37 : f32 to vector<160x128xf32>
    %73 = arith.mulf %72, %71 : vector<160x128xf32>
    %74 = arith.mulf %61, %73 : vector<160x128xf32>
    %75 = tpu.iota {dimensions = array<i32: 0>} : vector<160x1xi32>
    %c0_i32_38 = arith.constant 0 : i32
    %76 = arith.cmpi ne, %arg1, %c0_i32_38 : i32
    %c16_i32 = arith.constant 16 : i32
    %77 = vector.broadcast %c16_i32 : i32 to vector<160x1xi32>
    %78 = arith.cmpi sge, %75, %77 : vector<160x1xi32>
    %79 = vector.broadcast %76 : i1 to vector<160x1xi1>
    %80 = arith.ori %79, %78 : vector<160x1xi1>
    %c1_i32_39 = arith.constant 1 : i32
    %81 = arith.cmpi ne, %arg1, %c1_i32_39 : i32
    %c144_i32 = arith.constant 144 : i32
    %82 = vector.broadcast %c144_i32 : i32 to vector<160x1xi32>
    %83 = arith.cmpi slt, %75, %82 : vector<160x1xi32>
    %84 = vector.broadcast %81 : i1 to vector<160x1xi1>
    %85 = arith.ori %84, %83 : vector<160x1xi1>
    %86 = arith.andi %80, %85 : vector<160x1xi1>
    %cst_40 = arith.constant 0.000000e+00 : f32
    %87 = vector.shape_cast %86 : vector<160x1xi1> to vector<160x1xi1>
    %88 = vector.broadcast %87 : vector<160x1xi1> to vector<160x128xi1>
    %89 = vector.broadcast %cst_40 : f32 to vector<160x128xf32>
    %90 = arith.select %88, %74, %89 : vector<160x128xi1>, vector<160x128xf32>
    %cst_41 = arith.constant 0.000000e+00 : f32
    %91 = vector.broadcast %cst_41 : f32 to vector<10x128xf32>
    %c0_42 = arith.constant 0 : index
    %c0_43 = arith.constant 0 : index
    %c0_44 = arith.constant 0 : index
    %92 = vector.load %arg8[%c0_42, %c0_43, %c0_44] : memref<10x18x128xf32, #tpu.memory_space<vmem>>, vector<10x1x128xf32>
    %93 = vector.shape_cast %92 : vector<10x1x128xf32> to vector<10x128xf32>
    %94 = vector.shape_cast %91 : vector<10x128xf32> to vector<10x1x128xf32>
    tpu.vector_store %arg8[%c0_42, %c0_43, %c0_44], %94 {strides = array<i32>} : memref<10x18x128xf32, #tpu.memory_space<vmem>>, vector<10x1x128xf32>,
    %c0_45 = arith.constant 0 : index
    %c17 = arith.constant 17 : index
    %c0_46 = arith.constant 0 : index
    %95 = vector.load %arg8[%c0_45, %c17, %c0_46] : memref<10x18x128xf32, #tpu.memory_space<vmem>>, vector<10x1x128xf32>
    %96 = vector.shape_cast %95 : vector<10x1x128xf32> to vector<10x128xf32>
    %97 = vector.shape_cast %91 : vector<10x128xf32> to vector<10x1x128xf32>
    tpu.vector_store %arg8[%c0_45, %c17, %c0_46], %97 {strides = array<i32>} : memref<10x18x128xf32, #tpu.memory_space<vmem>>, vector<10x1x128xf32>,
    %98 = vector.shape_cast %90 : vector<160x128xf32> to vector<10x16x128xf32>
    %c0_47 = arith.constant 0 : index
    %c1_48 = arith.constant 1 : index
    %c0_49 = arith.constant 0 : index
    %99 = vector.load %arg8[%c0_47, %c1_48, %c0_49] : memref<10x18x128xf32, #tpu.memory_space<vmem>>, vector<10x16x128xf32>
    tpu.vector_store %arg8[%c0_47, %c1_48, %c0_49], %98 {strides = array<i32>} : memref<10x18x128xf32, #tpu.memory_space<vmem>>, vector<10x16x128xf32>,
    %c0_50 = arith.constant 0 : index
    %c0_51 = arith.constant 0 : index
    %c0_52 = arith.constant 0 : index
    %100 = vector.load %arg8[%c0_50, %c0_51, %c0_52] : memref<10x18x128xf32, #tpu.memory_space<vmem>>, vector<8x16x128xf32>
    %101 = vector.shape_cast %100 : vector<8x16x128xf32> to vector<128x128xf32>
    %102 = arith.truncf %101 : vector<128x128xf32> to vector<128x128xbf16>
    %c0_53 = arith.constant 0 : index
    %c1_54 = arith.constant 1 : index
    %c0_55 = arith.constant 0 : index
    %103 = vector.load %arg8[%c0_53, %c1_54, %c0_55] : memref<10x18x128xf32, #tpu.memory_space<vmem>>, vector<8x16x128xf32>
    %104 = vector.shape_cast %103 : vector<8x16x128xf32> to vector<128x128xf32>
    %105 = arith.truncf %104 : vector<128x128xf32> to vector<128x128xbf16>
    %c0_56 = arith.constant 0 : index
    %c2_57 = arith.constant 2 : index
    %c0_58 = arith.constant 0 : index
    %106 = vector.load %arg8[%c0_56, %c2_57, %c0_58] : memref<10x18x128xf32, #tpu.memory_space<vmem>>, vector<8x16x128xf32>
    %107 = vector.shape_cast %106 : vector<8x16x128xf32> to vector<128x128xf32>
    %108 = arith.truncf %107 : vector<128x128xf32> to vector<128x128xbf16>
    %c1_59 = arith.constant 1 : index
    %c0_60 = arith.constant 0 : index
    %c0_61 = arith.constant 0 : index
    %109 = vector.load %arg8[%c1_59, %c0_60, %c0_61] : memref<10x18x128xf32, #tpu.memory_space<vmem>>, vector<8x16x128xf32>
    %110 = vector.shape_cast %109 : vector<8x16x128xf32> to vector<128x128xf32>
    %111 = arith.truncf %110 : vector<128x128xf32> to vector<128x128xbf16>
    %c1_62 = arith.constant 1 : index
    %c1_63 = arith.constant 1 : index
    %c0_64 = arith.constant 0 : index
    %112 = vector.load %arg8[%c1_62, %c1_63, %c0_64] : memref<10x18x128xf32, #tpu.memory_space<vmem>>, vector<8x16x128xf32>
    %113 = vector.shape_cast %112 : vector<8x16x128xf32> to vector<128x128xf32>
    %114 = arith.truncf %113 : vector<128x128xf32> to vector<128x128xbf16>
    %c1_65 = arith.constant 1 : index
    %c2_66 = arith.constant 2 : index
    %c0_67 = arith.constant 0 : index
    %115 = vector.load %arg8[%c1_65, %c2_66, %c0_67] : memref<10x18x128xf32, #tpu.memory_space<vmem>>, vector<8x16x128xf32>
    %116 = vector.shape_cast %115 : vector<8x16x128xf32> to vector<128x128xf32>
    %117 = arith.truncf %116 : vector<128x128xf32> to vector<128x128xbf16>
    %c2_68 = arith.constant 2 : index
    %c0_69 = arith.constant 0 : index
    %c0_70 = arith.constant 0 : index
    %118 = vector.load %arg8[%c2_68, %c0_69, %c0_70] : memref<10x18x128xf32, #tpu.memory_space<vmem>>, vector<8x16x128xf32>
    %119 = vector.shape_cast %118 : vector<8x16x128xf32> to vector<128x128xf32>
    %120 = arith.truncf %119 : vector<128x128xf32> to vector<128x128xbf16>
    %c2_71 = arith.constant 2 : index
    %c1_72 = arith.constant 1 : index
    %c0_73 = arith.constant 0 : index
    %121 = vector.load %arg8[%c2_71, %c1_72, %c0_73] : memref<10x18x128xf32, #tpu.memory_space<vmem>>, vector<8x16x128xf32>
    %122 = vector.shape_cast %121 : vector<8x16x128xf32> to vector<128x128xf32>
    %123 = arith.truncf %122 : vector<128x128xf32> to vector<128x128xbf16>
    %c2_74 = arith.constant 2 : index
    %c2_75 = arith.constant 2 : index
    %c0_76 = arith.constant 0 : index
    %124 = vector.load %arg8[%c2_74, %c2_75, %c0_76] : memref<10x18x128xf32, #tpu.memory_space<vmem>>, vector<8x16x128xf32>
    %125 = vector.shape_cast %124 : vector<8x16x128xf32> to vector<128x128xf32>
    %126 = arith.truncf %125 : vector<128x128xf32> to vector<128x128xbf16>
    %127 = tpu.concatenate %102, %105, %108, %111, %114, %117, %120, %123, %126 in 1 : vector<128x128xbf16>, vector<128x128xbf16>, vector<128x128xbf16>, vector<128x128xbf16>, vector<128x128xbf16>, vector<128x128xbf16>, vector<128x128xbf16>, vector<128x128xbf16>, vector<128x128xbf16> -> vector<128x1152xbf16>
    %c0_77 = arith.constant 0 : index
    %c0_78 = arith.constant 0 : index
    %128 = vector.load %arg5[%c0_77, %c0_78] : memref<1152x32xbf16, #tpu.memory_space<vmem>>, vector<1152x32xbf16>
    %cst_79 = arith.constant dense<0.000000e+00> : vector<128x32xf32>
    %129 = tpu.matmul %127, %128, %cst_79 {dimension_numbers = #tpu.dot_dimension_numbers<[1], [0], [0], [1], [0, 0, 1, 1], [], []>} : vector<128x1152xbf16>, vector<1152x32xbf16>, vector<128x32xf32> -> vector<128x32xf32>
    %c0_80 = arith.constant 0 : index
    %c0_81 = arith.constant 0 : index
    %130 = vector.load %arg6[%c0_80, %c0_81] : memref<1x32xf32, #tpu.memory_space<vmem>>, vector<1x32xf32>
    %131 = vector.broadcast %130 : vector<1x32xf32> to vector<128x32xf32>
    %132 = arith.addf %129, %131 : vector<128x32xf32>
    %c0_82 = arith.constant 0 : index
    %c0_83 = arith.constant 0 : index
    %c0_84 = arith.constant 0 : index
    %133 = vector.load %arg7[%c0_82, %c0_83, %c0_84] : memref<1x128x32xf32, #tpu.memory_space<vmem>>, vector<1x128x32xf32>
    %134 = vector.shape_cast %133 : vector<1x128x32xf32> to vector<128x32xf32>
    %135 = vector.shape_cast %132 : vector<128x32xf32> to vector<1x128x32xf32>
    tpu.vector_store %arg7[%c0_82, %c0_83, %c0_84], %135 {strides = array<i32>} : memref<1x128x32xf32, #tpu.memory_space<vmem>>, vector<1x128x32xf32>,
    return
  }
  func.func @transform_0(%arg0: i32, %arg1: i32) -> (i32, i32, i32, i32) {
    %c0_i32 = arith.constant 0 : i32
    %c0_i32_0 = arith.constant 0 : i32
    %c0_i32_1 = arith.constant 0 : i32
    %c0_i32_2 = arith.constant 0 : i32
    return %arg0, %c0_i32, %c0_i32_0, %c0_i32_1 : i32, i32, i32, i32
  }
  func.func @transform_1(%arg0: i32, %arg1: i32) -> (i32, i32) {
    %c0_i32 = arith.constant 0 : i32
    %c0_i32_0 = arith.constant 0 : i32
    %c0_i32_1 = arith.constant 0 : i32
    return %c0_i32, %c0_i32_0 : i32, i32
  }
  func.func @transform_2(%arg0: i32, %arg1: i32) -> (i32, i32) {
    %c0_i32 = arith.constant 0 : i32
    %c0_i32_0 = arith.constant 0 : i32
    %c0_i32_1 = arith.constant 0 : i32
    return %c0_i32, %c0_i32_0 : i32, i32
  }
  func.func @transform_3(%arg0: i32, %arg1: i32) -> (i32, i32) {
    %c0_i32 = arith.constant 0 : i32
    %c0_i32_0 = arith.constant 0 : i32
    %c0_i32_1 = arith.constant 0 : i32
    return %c0_i32, %c0_i32_0 : i32, i32
  }
  func.func @transform_4(%arg0: i32, %arg1: i32) -> (i32, i32) {
    %c0_i32 = arith.constant 0 : i32
    %c0_i32_0 = arith.constant 0 : i32
    %c0_i32_1 = arith.constant 0 : i32
    return %c0_i32, %c0_i32_0 : i32, i32
  }
  func.func @transform_5(%arg0: i32, %arg1: i32) -> (i32, i32, i32) {
    %c0_i32 = arith.constant 0 : i32
    %c0_i32_0 = arith.constant 0 : i32
    return %arg0, %arg1, %c0_i32 : i32, i32, i32
  }
}

</mosaic_0001>

<bundles_post_ra>
// kernel: tpu_custom_call.1
= control target key start
LH: loop header
LB: loop body
LE: loop exit
PB: predicated region body
PF: predicated region fallthrough
CT: control target
= control target key end

     0   :  { %s3993_s18 = smov 0   ;;  %s3995_s19 = smov 0   ;;  %s5080_s0 = inlined_call_operand.vmem [shape: f32[2,20,18,32], index: 0, kind: input, shape index: {}]   ;;  %s5081_s1 = inlined_call_operand.vmem [shape: bf16[288,128], index: 1, kind: input, shape index: {}]   ;;  %s5082_s2 = inlined_call_operand.vmem [shape: f32[1,128], index: 2, kind: input, shape index: {}]   ;;  %s5083_s3 = inlined_call_operand.vmem [shape: bf16[1152,32], index: 3, kind: input, shape index: {}]   ;;  %s5084_s4 = inlined_call_operand.vmem [shape: f32[1,32], index: 4, kind: input, shape index: {}]   ;;  %s5085_s5 = inlined_call_operand.vmem [shape: f32[2,256,32], index: 5, kind: output, shape index: {}]  }
   0x1   :  { %s3997_s20 = smov 0   ;;  %s3999_s21 = smov 0  }
   0x2   :  { %s4001_s22 = smov 0  }
   0x3 LB: > { %s24_s23 = sadd.s32 1, %s3949_s20  ;;  %s27_s24 = sadd.s32 1, %s3953_s21  ;;  %s3957_s22 = sphi %s4001_s22, %s15_s22   ;;  %s3953_s21 = sphi %s3999_s21, %s5093_s21   ;;  %s3949_s20 = sphi %s3997_s20, %s5092_s20   ;;  %s3945_s19 = sphi %s3995_s19, %s5091_s19   ;;  %s3941_s18 = sphi %s3993_s18, %s5090_s18  }
   0x4   : > { %p25_p0 = scmp.ge.s32.totalorder %s24_s23, 2  ;;  %p3087_p1 = scmp.ge.s32.totalorder %s3957_s22, 1 }
   0x5   : > { %p201_p2 = scmp.lt.s32.totalorder %s3957_s22, 5 }
   0x6   : > { %s5095_s23 = smov (%p25_p0, %s24_s23), 0  ;;  %s5097_s24 = smov (!%p25_p0, %s27_s24), %s3953_s21 }
   0x7   : > { %p202_p3 = pnand %p3087_p1, %p201_p2  ;;  %p29_p4 = scmp.ge.s32.totalorder %s5097_s24, 2 }
   0x8   : > { %p233_p5 = scmp.lt.s32.totalorder (!%p202_p3), %s3945_s19, 1  ;;  %v3783_v0 = vld [vmem:[%s5081_s1 + $0x40] sm:$0xff] (!%p202_p3)   ;;  %v3785_v2 = vld [vmem:[%s5081_s1 + $0x48] sm:$0xff] (!%p202_p3)   ;;  %s3093_s6 = smul.u32 (!%p202_p3), 192, %s3941_s18  ;;  %v3787_v4 = vld [vmem:[%s5081_s1 + $0x50] sm:$0xff] (!%p202_p3)   ;;  %vm708_vm0 = vcmask (!%p202_p3), 261120  }
   0x9   : > { %s5099_s24 = smov (%p29_p4, %s5097_s24), 0  ;;  %205 = sbr.rel (%p202_p3) target bundleno = 806 (0x326), region = 40 }
   0xa   : > { %v3784_v1 = vld [vmem:[%s5081_s1] sm:$0xff] (!%p202_p3)   ;;  %3322 = vmatprep.subr.bf16.mxu0 (!%p202_p3), %v3783_v0  ;;  %v3786_v3 = vld [vmem:[%s5081_s1 + $0x8] sm:$0xff] (!%p202_p3)   ;;  %v3788_v5 = vld [vmem:[%s5081_s1 + $0x10] sm:$0xff] (!%p202_p3)   ;;  %s3959_s27 = smov (!%p202_p3), 64   ;;  %s3960_s28 = smov (!%p202_p3), 32   ;;  %vm739_vm1 = vcmask (!%p202_p3), 523264  }
   0xb   : > { %3323 = vmatpush3.bf16.msra.mxu0 (!%p202_p3), %v3784_v1  ;;  %v3789_v6 = vld [vmem:[%s5081_s1 + $0x58] sm:$0xff] (!%p202_p3)   ;;  %s3961_s29 = smov (!%p202_p3), 96   ;;  %v3791_v40 = vld [vmem:[%s5081_s1 + $0x60] sm:$0xff] (!%p202_p3)   ;;  %v3793_v45 = vld [vmem:[%s5081_s1 + $0x68] sm:$0xff] (!%p202_p3)   ;;  %vm760_vm2 = vcmask (!%p202_p3), 785408   ;;  %p1479_p6 = scmp.ne.s32.totalorder (!%p202_p3), %s3941_s18, 0 }
   0xc   : > { %3324 = vmatprep.subr.bf16.mxu0 (!%p202_p3), %v3785_v2  ;;  %v3790_v37 = vld [vmem:[%s5081_s1 + $0x18] sm:$0xff] (!%p202_p3)   ;;  %v3792_v42 = vld [vmem:[%s5081_s1 + $0x20] sm:$0xff] (!%p202_p3)   ;;  %v3794_v46 = vld [vmem:[%s5081_s1 + $0x28] sm:$0xff] (!%p202_p3)   ;;  %p1523_p7 = scmp.ne.s32.totalorder (!%p202_p3), %s3941_s18, 1  ;;  %s3089_s15 = sshll.u32 (!%p202_p3), %s3941_s18, 4 }
   0xd   : > { %v3795_v47 = vld [vmem:[%s5081_s1 + $0x70] sm:$0xff] (!%p202_p3)   ;;  %v3797_v52 = vld [vmem:[%s5081_s1 + $0x78] sm:$0xff] (!%p202_p3)   ;;  %v3798_v55 = vld [vmem:[%s5081_s1 + $0x80] sm:$0xff] (!%p202_p3)   ;;  %p241_p8 = scmp.lt.s32.totalorder (!%p202_p3), %s3089_s15, 31 }
   0xe   : > { %v3796_v51 = vld [vmem:[%s5081_s1 + $0x30] sm:$0xff] (!%p202_p3)   ;;  %v3799_v57 = vld [vmem:[%s5081_s1 + $0x38] sm:$0xff] (!%p202_p3)   ;;  %3682 = vmatprep.subr.bf16.mxu1 (!%p202_p3), %v3798_v55  ;;  %v3800_v58 = vld [vmem:[%s5081_s1 + $0x88] sm:$0xff] (!%p202_p3)  }
   0xf   : > { %3325 = vmatpush3.bf16.msra.mxu0 (!%p202_p3), %v3786_v3  ;;  %3683 = vmatpush3.bf16.msra.mxu1 (!%p202_p3), %v3798_v55 }
  0x10   : > { %s5101_s19 = smov (!%p233_p5, %s3945_s19), 1  ;;  %3326 = vmatprep.subr.bf16.mxu0 %v3787_v4  ;;  %3684 = vmatprep.subr.bf16.mxu1 %v3800_v58  ;;  %s5103_s15 = smov (!%p241_p8, %s3089_s15), 31 }
  0x11   : > { %s3738_s9 = smul.u32 480, %s5101_s19  ;;  %s3090_s18 = sshll.u32 %s5101_s19, 5 }
  0x12   : > { %s1500_s11 = scalar_select %p1479_p6, 1, 0 }
  0x13   : > { %s237_s14 = scalar_lea.vmem %s5080_s0, %s3738_s9  ;;  %3327 = vmatpush3.bf16.msra.mxu0 %v3788_v5  ;;  %3685 = vmatpush3.bf16.msra.mxu1 %v3800_v58 }
  0x14   : > { %s4050_s17 = scalar_lea.vmem %s237_s14, %s3093_s6  ;;  %3328 = vmatprep.subr.bf16.mxu0 %v3789_v6 }
  0x15   : > { %v3158_v7 = vld [vmem:[%s4050_s17 + $0x30] sm:$0xff]  ;;  %v3159_v8 = vld [vmem:[%s4050_s17 + $0x38] sm:$0xff]  ;;  %v3137_v11 = vld [vmem:[%s4050_s17 + $0x22] sm:$0xff]  ;;  %s1544_s16 = scalar_select %p1523_p7, 1, 0 }
  0x16   : > { %v3136_v9 = vld [vmem:[%s4050_s17 + $0x1a] sm:$0xff]  ;;  %v4058_v10 = vpack.c.bf16 %v3159_v8, %v3158_v7  ;;  %v312_v12 = vld [vmem:[%s4050_s17 + $0x2] sm:$0xff]  ;;  %v313_v13 = vld [vmem:[%s4050_s17 + $0xa] sm:$0xff] }
  0x17   : > { %v425_v14 = vpack.c.bf16 %v3137_v11, %v3136_v9  ;;  %v282_v15 = vld [vmem:[%s4050_s17 + $0x1] sm:$0xff]  ;;  %v283_v16 = vld [vmem:[%s4050_s17 + $0x9] sm:$0xff]  ;;  %v332_v17 = vpack.c.bf16 %v313_v13, %v312_v12  ;;  %v3096_v19 = vld [vmem:[%s4050_s17 + $0x18] sm:$0xff]  ;;  %3329 = vmatpush3.bf16.msra.mxu0 %v3790_v37 }
  0x18   : > { %658 = vrot.lane.b32.xlu1 %v4058_v10, %s3959_s27  ;;  %v302_v18 = vpack.c.bf16 %v283_v16, %v282_v15  ;;  %v3097_v20 = vld [vmem:[%s4050_s17 + $0x20] sm:$0xff]  ;;  %v3138_v21 = vld [vmem:[%s4050_s17 + $0x32] sm:$0xff]  ;;  %v3160_v31 = vld [vmem:[%s4050_s17 + $0x48] sm:$0xff]  ;;  %3330 = vmatprep.subr.bf16.mxu0 %v3791_v40 }
  0x19   : > { %628 = vrot.lane.b32.xlu0 %v425_v14, %s3960_s28  ;;  %v3178_v22 = vld [vmem:[%s4050_s17 + $0x31] sm:$0xff]  ;;  %v3179_v23 = vld [vmem:[%s4050_s17 + $0x39] sm:$0xff]  ;;  %v4075_v26 = vpack.c.bf16 %v3097_v20, %v3096_v19  ;;  %v285_v29 = vld [vmem:[%s4050_s17 + $0x21] sm:$0xff] }
  0x1a   : > { %v3139_v24 = vld [vmem:[%s4050_s17 + $0x3a] sm:$0xff]  ;;  %v4078_v27 = vpack.c.bf16 %v3179_v23, %v3178_v22  ;;  %v3161_v32 = vld [vmem:[%s4050_s17 + $0x50] sm:$0xff]  ;;  %v3163_v44 = vld [vmem:[%s4050_s17 + $0x68] sm:$0xff] }
  0x1b   : > { %v426_v25 = vpack.c.bf16 %v3139_v24, %v3138_v21  ;;  %v284_v28 = vld [vmem:[%s4050_s17 + $0x19] sm:$0xff]  ;;  %v4094_v33 = vpack.c.bf16 %v3161_v32, %v3160_v31  ;;  %v3180_v34 = vld [vmem:[%s4050_s17 + $0x49] sm:$0xff]  ;;  %v3181_v35 = vld [vmem:[%s4050_s17 + $0x51] sm:$0xff]  ;;  %3331 = vmatpush3.bf16.msra.mxu0 %v3792_v42 }
  0x1c   : > { %568 = vrot.lane.b32.xlu1 %v332_v17, %s3959_s27  ;;  %v4085_v30 = vpack.c.bf16 %v285_v29, %v284_v28  ;;  %v4101_v36 = vpack.c.bf16 %v3181_v35, %v3180_v34  ;;  %v3140_v38 = vld [vmem:[%s4050_s17 + $0x4a] sm:$0xff]  ;;  %v3141_v39 = vld [vmem:[%s4050_s17 + $0x52] sm:$0xff]  ;;  %v3162_v41 = vld [vmem:[%s4050_s17 + $0x60] sm:$0xff]  ;;  %3332 = vmatprep.subr.bf16.mxu0 %v3793_v45 }
  0x1d   : > { %538 = vrot.lane.b32.xlu0 %v302_v18, %s3960_s28  ;;  %3686 = vmatprep.mubr.msk.bf16.mxu1 %vm708_vm0, %v426_v25  ;;  %v427_v43 = vpack.c.bf16 %v3141_v39, %v3140_v38  ;;  %v4132_v48 = vpack.c.bf16 %v3163_v44, %v3162_v41  ;;  %v3182_v49 = vld [vmem:[%s4050_s17 + $0x61] sm:$0xff]  ;;  %v3183_v50 = vld [vmem:[%s4050_s17 + $0x69] sm:$0xff]  ;;  %v3164_v59 = vld [vmem:[%s4050_s17 + $0x78] sm:$0xff] }
  0x1e   : > { %v3142_v53 = vld [vmem:[%s4050_s17 + $0x62] sm:$0xff]  ;;  %v3143_v54 = vld [vmem:[%s4050_s17 + $0x6a] sm:$0xff]  ;;  %v4150_v56 = vpack.c.bf16 %v3183_v50, %v3182_v49  ;;  %v3184_v62 = vld [vmem:[%s4050_s17 + $0x79] sm:$0xff] }
  0x1f   : > { %3333 = vmatpush3.bf16.msra.mxu0 %v3794_v46  ;;  %v3165_v60 = vld [vmem:[%s4050_s17 + $0x80] sm:$0xff]  ;;  %v428_v61 = vpack.c.bf16 %v3143_v54, %v3142_v53  ;;  %3687 = vmatmul.mubr.msk.bf16.vlgmr.msra.gmra.mrb[0].mxu1 %vm708_vm0, %v427_v43  ;;  %v3146_v3 = vld [vmem:[%s4050_s17 + $0x92] sm:$0xff]  ;;  %v3148_v11 = vld [vmem:[%s4050_s17 + $0xaa] sm:$0xff] }
  0x20   : > { %598 = vrot.lane.b32.xlu1 %v4075_v26, %s3961_s29  ;;  %3334 = vmatprep.subr.bf16.mxu0 %v3795_v47  ;;  %v3185_v63 = vld [vmem:[%s4050_s17 + $0x81] sm:$0xff]  ;;  %v4169_v0 = vpack.c.bf16 %v3165_v60, %v3164_v59  ;;  %v3166_v7 = vld [vmem:[%s4050_s17 + $0x90] sm:$0xff]  ;;  %v3167_v8 = vld [vmem:[%s4050_s17 + $0x98] sm:$0xff] }
  0x21   : > { %688 = vrot.lane.b32.xlu0 %v4078_v27, %s3961_s29  ;;  %v3144_v1 = vld [vmem:[%s4050_s17 + $0x7a] sm:$0xff]  ;;  %v3145_v2 = vld [vmem:[%s4050_s17 + $0x82] sm:$0xff]  ;;  %3690 = vmatprep.mubr.msk.bf16.mxu1 %vm708_vm0, %v428_v61  ;;  %v4180_v5 = vpack.c.bf16 %v3185_v63, %v3184_v62  ;;  %v3149_v12 = vld [vmem:[%s4050_s17 + $0xb2] sm:$0xff]  ;;  %v4199_v17 = vpack.c.bf16 %v3167_v8, %v3166_v7 }
  0x22   : > { %v3147_v4 = vld [vmem:[%s4050_s17 + $0x9a] sm:$0xff]  ;;  %v429_v6 = vpack.c.bf16 %v3145_v2, %v3144_v1  ;;  %v3186_v13 = vld [vmem:[%s4050_s17 + $0x91] sm:$0xff]  ;;  %v3150_v15 = vld [vmem:[%s4050_s17 + $0xc2] sm:$0xff]  ;;  %v431_v18 = vpack.c.bf16 %v3149_v12, %v3148_v11 }
  0x23   : > { %3335 = vmatpush3.bf16.msra.mxu0 %v3796_v51  ;;  %v430_v9 = vpack.c.bf16 %v3147_v4, %v3146_v3  ;;  %v3151_v16 = vld [vmem:[%s4050_s17 + $0xca] sm:$0xff]  ;;  %v3152_v21 = vld [vmem:[%s4050_s17 + $0xda] sm:$0xff]  ;;  %v3153_v22 = vld [vmem:[%s4050_s17 + $0xe2] sm:$0xff] }
  0x24   : > { %540 = vrot.lane.b32.xlu1 %v4085_v30, %s3960_s28  ;;  %3336 = vmatprep.subr.bf16.mxu0 %v3797_v52  ;;  %v432_v20 = vpack.c.bf16 %v3151_v16, %v3150_v15  ;;  %v3168_v23 = vld [vmem:[%s4050_s17 + $0xa8] sm:$0xff]  ;;  %v3169_v24 = vld [vmem:[%s4050_s17 + $0xb0] sm:$0xff]  ;;  %v3155_v28 = vld [vmem:[%s4050_s17 + $0xfa] sm:$0xff]  ;;  %v433_v32 = vpack.c.bf16 %v3153_v22, %v3152_v21 }
  0x25   : > { %630 = vrot.lane.b32.xlu0 %v426_v25, %s3960_s28  ;;  %v3188_v29 = vld [vmem:[%s4050_s17 + $0xa9] sm:$0xff]  ;;  %v3189_v31 = vld [vmem:[%s4050_s17 + $0xb1] sm:$0xff]  ;;  %v4223_v34 = vpack.c.bf16 %v3169_v24, %v3168_v23  ;;  %v3170_v38 = vld [vmem:[%s4050_s17 + $0xc0] sm:$0xff] }
  0x26   : > { %v4230_v37 = vpack.c.bf16 %v3189_v31, %v3188_v29  ;;  %v3171_v39 = vld [vmem:[%s4050_s17 + $0xc8] sm:$0xff]  ;;  %v3172_v44 = vld [vmem:[%s4050_s17 + $0xd8] sm:$0xff]  ;;  %v3173_v45 = vld [vmem:[%s4050_s17 + $0xe0] sm:$0xff] }
  0x27   : > { %3337 = vmatpush3.bf16.msra.mxu0 %v3799_v57  ;;  %3691 = vmatmul.mubr.msk.bf16.gmra.mrb[4].mxu1 %vm708_vm0, %v429_v6  ;;  %v3190_v40 = vld [vmem:[%s4050_s17 + $0xc1] sm:$0xff]  ;;  %v3191_v41 = vld [vmem:[%s4050_s17 + $0xc9] sm:$0xff]  ;;  %v4243_v42 = vpack.c.bf16 %v3171_v39, %v3170_v38  ;;  %v4259_v46 = vpack.c.bf16 %v3173_v45, %v3172_v44  ;;  %v3192_v47 = vld [vmem:[%s4050_s17 + $0xd9] sm:$0xff] }
  0x28   : > { %570 = vrot.lane.b32.xlu1 %v425_v14, %s3959_s27  ;;  %3694 = vmatprep.mubr.msk.bf16.mxu1 %vm708_vm0, %v430_v9  ;;  %v3187_v14 = vld [vmem:[%s4050_s17 + $0x99] sm:$0xff]  ;;  %v3193_v49 = vld [vmem:[%s4050_s17 + $0xe1] sm:$0xff]  ;;  %v3174_v51 = vld [vmem:[%s4050_s17 + $0xf0] sm:$0xff] }
  0x29   : > { %660 = vrot.lane.b32.xlu0 %v4094_v33, %s3959_s27  ;;  %v4204_v19 = vpack.c.bf16 %v3187_v14, %v3186_v13  ;;  %v4266_v50 = vpack.c.bf16 %v3193_v49, %v3192_v47  ;;  %v3175_v52 = vld [vmem:[%s4050_s17 + $0xf8] sm:$0xff]  ;;  %v3216_v53 = vld [vmem:[%s4050_s17 + $0x10a] sm:$0xff]  ;;  %v252_v4 = vld [vmem:[%s4050_s17] sm:$0xff] }
  0x2a   : > { %v3217_v54 = vld [vmem:[%s4050_s17 + $0x112] sm:$0xff]  ;;  %v466_v57 = vpack.c.bf16 %v3175_v52, %v3174_v51  ;;  %v3196_v1 = vld [vmem:[%s4050_s17 + $0x109] sm:$0xff] }
  0x2b   : > { %v527_v55 = vpack.c.bf16 %v3217_v54, %v3216_v53  ;;  %v3194_v58 = vld [vmem:[%s4050_s17 + $0xf1] sm:$0xff]  ;;  %v3195_v59 = vld [vmem:[%s4050_s17 + $0xf9] sm:$0xff] }
  0x2c   : > { %600 = vrot.lane.b32.xlu1 %v4058_v10, %s3961_s29  ;;  %v4284_v60 = vpack.c.bf16 %v3195_v59, %v3194_v58  ;;  %v3177_v62 = vld [vmem:[%s4050_s17 + $0x110] sm:$0xff] }
  0x2d   : > { %690 = vrot.lane.b32.xlu0 %v4101_v36, %s3961_s29  ;;  %v3197_v2 = vld [vmem:[%s4050_s17 + $0x111] sm:$0xff] }
  0x2e   : > { %v497_v3 = vpack.c.bf16 %v3197_v2, %v3196_v1 }
  0x2f   : > { %3695 = vmatmul.mubr.msk.bf16.gmra.mrb[8].mxu1 %vm708_vm0, %v431_v18 }
  0x30   : > { %542 = vrot.lane.b32.xlu1 %v4078_v27, %s3960_s28  ;;  %3698 = vmatprep.mubr.msk.bf16.mxu1 %vm708_vm0, %v432_v20 }
  0x31   : > { %632 = vrot.lane.b32.xlu0 %v427_v43, %s3960_s28 }
  0x34   : > { %572 = vrot.lane.b32.xlu1 %v426_v25, %s3959_s27  ;;  %v3154_v25 = vld [vmem:[%s4050_s17 + $0xf2] sm:$0xff] }
  0x35   : > { %662 = vrot.lane.b32.xlu0 %v4132_v48, %s3959_s27  ;;  %v434_v35 = vpack.c.bf16 %v3155_v28, %v3154_v25 }
  0x37   : > { %3699 = vmatmul.mubr.msk.bf16.gmra.mrb[12].mxu1 %vm708_vm0, %v433_v32 }
  0x38   : > { %602 = vrot.lane.b32.xlu1 %v4094_v33, %s3961_s29  ;;  %3702 = vmatprep.mubr.msk.bf16.mxu1 %vm708_vm0, %v434_v35 }
  0x39   : > { %692 = vrot.lane.b32.xlu0 %v4150_v56, %s3961_s29 }
  0x3c   : > { %544 = vrot.lane.b32.xlu1 %v4101_v36, %s3960_s28 }
  0x3d   : > { %634 = vrot.lane.b32.xlu0 %v428_v61, %s3960_s28 }
  0x3f   : > { %3703 = vmatmul.mubr.msk.bf16.gmra.mrb[16].mxu1 %vm708_vm0, %v527_v55 }
  0x40   : > { %574 = vrot.lane.b32.xlu1 %v427_v43, %s3959_s27  ;;  %v4248_v43 = vpack.c.bf16 %v3191_v41, %v3190_v40 }
  0x41   : > { %664 = vrot.lane.b32.xlu0 %v4169_v0, %s3959_s27 }
  0x44   : > { %604 = vrot.lane.b32.xlu1 %v4132_v48, %s3961_s29 }
  0x45   : > { %694 = vrot.lane.b32.xlu0 %v4180_v5, %s3961_s29 }
  0x48   : > { %546 = vrot.lane.b32.xlu1 %v4150_v56, %s3960_s28 }
  0x49   : > { %636 = vrot.lane.b32.xlu0 %v429_v6, %s3960_s28 }
  0x4c   : > { %576 = vrot.lane.b32.xlu1 %v428_v61, %s3959_s27  ;;  %v3176_v61 = vld [vmem:[%s4050_s17 + $0x108] sm:$0xff] }
  0x4d   : > { %666 = vrot.lane.b32.xlu0 %v4199_v17, %s3959_s27  ;;  %v467_v63 = vpack.c.bf16 %v3177_v62, %v3176_v61 }
  0x50   : > { %606 = vrot.lane.b32.xlu1 %v4169_v0, %s3961_s29 }
  0x51   : > { %696 = vrot.lane.b32.xlu0 %v4204_v19, %s3961_s29 }
  0x54   : > { %548 = vrot.lane.b32.xlu1 %v4180_v5, %s3960_s28 }
  0x55   : > { %638 = vrot.lane.b32.xlu0 %v430_v9, %s3960_s28 }
  0x58   : > { %578 = vrot.lane.b32.xlu1 %v429_v6, %s3959_s27  ;;  %v253_v6 = vld [vmem:[%s4050_s17 + $0x8] sm:$0xff] }
  0x59   : > { %668 = vrot.lane.b32.xlu0 %v4223_v34, %s3959_s27 }
  0x5c   : > { %608 = vrot.lane.b32.xlu1 %v4199_v17, %s3961_s29 }
  0x5d   : > { %698 = vrot.lane.b32.xlu0 %v4230_v37, %s3961_s29 }
  0x60   : > { %550 = vrot.lane.b32.xlu1 %v4204_v19, %s3960_s28 }
  0x61   : > { %640 = vrot.lane.b32.xlu0 %v431_v18, %s3960_s28 }
  0x64   : > { %580 = vrot.lane.b32.xlu1 %v430_v9, %s3959_s27  ;;  %v272_v9 = vpack.c.bf16 %v253_v6, %v252_v4 }
  0x65   : > { %670 = vrot.lane.b32.xlu0 %v4243_v42, %s3959_s27 }
  0x68   : > { %610 = vrot.lane.b32.xlu1 %v4223_v34, %s3961_s29 }
  0x69   : > { %700 = vrot.lane.b32.xlu0 %v4248_v43, %s3961_s29 }
  0x6c   : > { %552 = vrot.lane.b32.xlu1 %v4230_v37, %s3960_s28 }
  0x6d   : > { %642 = vrot.lane.b32.xlu0 %v432_v20, %s3960_s28 }
  0x70   : > { %582 = vrot.lane.b32.xlu1 %v431_v18, %s3959_s27 }
  0x71   : > { %672 = vrot.lane.b32.xlu0 %v4259_v46, %s3959_s27 }
  0x74   : > { %612 = vrot.lane.b32.xlu1 %v4243_v42, %s3961_s29 }
  0x75   : > { %702 = vrot.lane.b32.xlu0 %v4266_v50, %s3961_s29 }
  0x78   : > { %554 = vrot.lane.b32.xlu1 %v4248_v43, %s3960_s28 }
  0x79   : > { %644 = vrot.lane.b32.xlu0 %v433_v32, %s3960_s28 }
  0x7c   : > { %584 = vrot.lane.b32.xlu1 %v432_v20, %s3959_s27 }
  0x7d   : > { %674 = vrot.lane.b32.xlu0 %v466_v57, %s3959_s27 }
  0x80   : > { %614 = vrot.lane.b32.xlu1 %v4259_v46, %s3961_s29 }
  0x81   : > { %704 = vrot.lane.b32.xlu0 %v4284_v60, %s3961_s29 }
  0x84   : > { %556 = vrot.lane.b32.xlu1 %v4266_v50, %s3960_s28 }
  0x85   : > { %646 = vrot.lane.b32.xlu0 %v434_v35, %s3960_s28 }
  0x88   : > { %586 = vrot.lane.b32.xlu1 %v433_v32, %s3959_s27 }
  0x89   : > { %676 = vrot.lane.b32.xlu0 %v467_v63, %s3959_s27 }
  0x8a   : > { %v659_v7 = vpop.permute.xlu1 %658 }
  0x8b   : > { %v629_v8 = vpop.permute.xlu0 %628 }
  0x8c   : > { %616 = vrot.lane.b32.xlu1 %v466_v57, %s3961_s29  ;;  %v793_v13 = vsel %vm708_vm0, %v4085_v30, %v629_v8 }
  0x8d   : > { %706 = vrot.lane.b32.xlu0 %v497_v3, %s3961_s29  ;;  %v822_v20 = vsel %vm739_vm1, %v793_v13, %v659_v7 }
  0x8e   : > { %v569_v11 = vpop.permute.xlu1 %568 }
  0x8f   : > { %v539_v12 = vpop.permute.xlu0 %538 }
  0x90   : > { %v711_v14 = vsel %vm708_vm0, %v272_v9, %v539_v12 }
  0x91   : > { %v741_v16 = vsel %vm739_vm1, %v711_v14, %v569_v11 }
  0x92   : > { %v599_v15 = vpop.permute.xlu1 %598 }
  0x93   : > { %v689_v18 = vpop.permute.xlu0 %688  ;;  %v762_v21 = vsel %vm760_vm2, %v741_v16, %v599_v15 }
  0x94   : > { %v842_v22 = vsel %vm760_vm2, %v822_v20, %v689_v18 }
  0x95   : > { %1084 = vmatprep.mubr.bf16.mxu0 %v842_v22 }
  0x96   : > { %1085 = vmatmul.mubr.bf16.vlgmr.msra.gmra.mrb[0].mxu0 %v762_v21  ;;  %v541_v23 = vpop.permute.xlu1 %540 }
  0x97   : > { %v631_v24 = vpop.permute.xlu0 %630  ;;  %v714_v28 = vsel %vm708_vm0, %v4075_v26, %v541_v23 }
  0x98   : > { %v796_v29 = vsel %vm708_vm0, %v4078_v27, %v631_v24 }
  0x9a   : > { %v571_v25 = vpop.permute.xlu1 %570 }
  0x9b   : > { %v661_v30 = vpop.permute.xlu0 %660  ;;  %v743_v31 = vsel %vm739_vm1, %v714_v28, %v571_v25 }
  0x9c   : > { %v824_v35 = vsel %vm739_vm1, %v796_v29, %v661_v30 }
  0x9e   : > { %v601_v32 = vpop.permute.xlu1 %600 }
  0x9f   : > { %v691_v38 = vpop.permute.xlu0 %690  ;;  %v765_v39 = vsel %vm760_vm2, %v743_v31, %v601_v32 }
  0xa0   : > { %v845_v40 = vsel %vm760_vm2, %v824_v35, %v691_v38 }
  0xa1   : > { %1092 = vmatprep.mubr.bf16.mxu0 %v845_v40 }
  0xa2   : > { %1093 = vmatmul.mubr.bf16.gmra.mrb[4].mxu0 %v765_v39  ;;  %v543_v41 = vpop.permute.xlu1 %542 }
  0xa3   : > { %v633_v44 = vpop.permute.xlu0 %632  ;;  %v717_v26 = vsel %vm708_vm0, %v4058_v10, %v543_v41 }
  0xa4   : > { %v799_v27 = vsel %vm708_vm0, %v4101_v36, %v633_v44 }
  0xa6   : > { %v573_v45 = vpop.permute.xlu1 %572 }
  0xa7   : > { %v663_v47 = vpop.permute.xlu0 %662  ;;  %v745_v49 = vsel %vm739_vm1, %v717_v26, %v573_v45 }
  0xa8   : > { %v826_v52 = vsel %vm739_vm1, %v799_v27, %v663_v47 }
  0xaa   : > { %v603_v51 = vpop.permute.xlu1 %602 }
  0xab   : > { %v693_v53 = vpop.permute.xlu0 %692  ;;  %v768_v54 = vsel %vm760_vm2, %v745_v49, %v603_v51 }
  0xac   : > { %v848_v55 = vsel %vm760_vm2, %v826_v52, %v693_v53 }
  0xad   : > { %1100 = vmatprep.mubr.bf16.mxu0 %v848_v55 }
  0xae   : > { %1101 = vmatmul.mubr.bf16.gmra.mrb[8].mxu0 %v768_v54  ;;  %v545_v57 = vpop.permute.xlu1 %544 }
  0xaf   : > { %v635_v58 = vpop.permute.xlu0 %634  ;;  %v720_v10 = vsel %vm708_vm0, %v4094_v33, %v545_v57 }
  0xb0   : > { %v802_v36 = vsel %vm708_vm0, %v4150_v56, %v635_v58 }
  0xb2   : > { %v575_v59 = vpop.permute.xlu1 %574 }
  0xb3   : > { %v665_v61 = vpop.permute.xlu0 %664  ;;  %v747_v62 = vsel %vm739_vm1, %v720_v10, %v575_v59 }
  0xb4   : > { %v828_v1 = vsel %vm739_vm1, %v802_v36, %v665_v61 }
  0xb6   : > { %v605_v63 = vpop.permute.xlu1 %604 }
  0xb7   : > { %v695_v2 = vpop.permute.xlu0 %694  ;;  %v771_v3 = vsel %vm760_vm2, %v747_v62, %v605_v63 }
  0xb8   : > { %v851_v4 = vsel %vm760_vm2, %v828_v1, %v695_v2 }
  0xb9   : > { %1108 = vmatprep.mubr.bf16.mxu0 %v851_v4 }
  0xba   : > { %1109 = vmatmul.mubr.bf16.gmra.mrb[12].mxu0 %v771_v3  ;;  %v547_v6 = vpop.permute.xlu1 %546 }
  0xbb   : > { %v637_v7 = vpop.permute.xlu0 %636  ;;  %v723_v33 = vsel %vm708_vm0, %v4132_v48, %v547_v6 }
  0xbc   : > { %v805_v56 = vsel %vm708_vm0, %v4180_v5, %v637_v7 }
  0xbe   : > { %v577_v8 = vpop.permute.xlu1 %576 }
  0xbf   : > { %v667_v9 = vpop.permute.xlu0 %666  ;;  %v749_v11 = vsel %vm739_vm1, %v723_v33, %v577_v8 }
  0xc0   : > { %v830_v13 = vsel %vm739_vm1, %v805_v56, %v667_v9 }
  0xc2   : > { %v607_v12 = vpop.permute.xlu1 %606 }
  0xc3   : > { %v697_v14 = vpop.permute.xlu0 %696  ;;  %v774_v15 = vsel %vm760_vm2, %v749_v11, %v607_v12  ;;  %v3803_v11 = vld [vmem:[%s5083_s3 + $0x48] sm:$0xff]  }
  0xc4   : > { %v854_v16 = vsel %vm760_vm2, %v830_v13, %v697_v14  ;;  %v3804_v13 = vld [vmem:[%s5083_s3 + $0x8] sm:$0xff]  }
  0xc5   : > { %1116 = vmatprep.mubr.bf16.mxu0 %v854_v16  ;;  %v3807_v16 = vld [vmem:[%s5083_s3 + $0x50] sm:$0xff]  }
  0xc6   : > { %1117 = vmatmul.mubr.bf16.gmra.mrb[16].mxu0 %v774_v15  ;;  %v549_v18 = vpop.permute.xlu1 %548 }
  0xc7   : > { %v639_v20 = vpop.permute.xlu0 %638  ;;  %v726_v48 = vsel %vm708_vm0, %v4169_v0, %v549_v18 }
  0xc8   : > { %v808_v5 = vsel %vm708_vm0, %v4204_v19, %v639_v20  ;;  %v3808_v20 = vld [vmem:[%s5083_s3 + $0x10] sm:$0xff]  }
  0xca   : > { %v579_v21 = vpop.permute.xlu1 %578 }
  0xcb   : > { %v669_v22 = vpop.permute.xlu0 %668  ;;  %v751_v23 = vsel %vm739_vm1, %v726_v48, %v579_v21  ;;  %v3805_v21 = vld [vmem:[%s5083_s3 + $0xc0] sm:$0xff]  }
  0xcc   : > { %v832_v25 = vsel %vm739_vm1, %v808_v5, %v669_v22  ;;  %v3809_v22 = vld [vmem:[%s5083_s3 + $0x58] sm:$0xff]   ;;  %v3806_v48 = vld [vmem:[%s5083_s3 + $0x80] sm:$0xff]   ;;  %3474 = vmatprep.subr.bf16.mxu0 %v3805_v21 }
  0xcd   : > { %v3810_v5 = vld [vmem:[%s5083_s3 + $0x18] sm:$0xff]   ;;  %3475 = vmatpush3.bf16.msra.mxu0 %v3806_v48 }
  0xce   : > { %v609_v24 = vpop.permute.xlu1 %608 }
  0xcf   : > { %v699_v30 = vpop.permute.xlu0 %698  ;;  %v777_v28 = vsel %vm760_vm2, %v751_v23, %v609_v24  ;;  %v3811_v23 = vld [vmem:[%s5083_s3 + $0xc8] sm:$0xff]   ;;  %v3812_v24 = vld [vmem:[%s5083_s3 + $0x60] sm:$0xff]  }
  0xd0   : > { %v857_v29 = vsel %vm760_vm2, %v832_v25, %v699_v30  ;;  %v3813_v25 = vld [vmem:[%s5083_s3 + $0x88] sm:$0xff]   ;;  %v3814_v30 = vld [vmem:[%s5083_s3 + $0x20] sm:$0xff]   ;;  %3476 = vmatprep.subr.bf16.mxu0 %v3811_v23 }
  0xd1   : > { %1124 = vmatprep.mubr.bf16.mxu0 %v857_v29  ;;  %3477 = vmatpush3.bf16.msra.mxu0 %v3813_v25  ;;  %v3816_v29 = vld [vmem:[%s5083_s3 + $0x68] sm:$0xff]  }
  0xd2   : > { %1125 = vmatmul.mubr.bf16.gmra.mrb[20].mxu0 %v777_v28  ;;  %v551_v31 = vpop.permute.xlu1 %550  ;;  %v3815_v28 = vld [vmem:[%s5083_s3 + $0xd0] sm:$0xff]  }
  0xd3   : > { %v641_v32 = vpop.permute.xlu0 %640  ;;  %v729_v0 = vsel %vm708_vm0, %v4199_v17, %v551_v31  ;;  %v3817_v31 = vld [vmem:[%s5083_s3 + $0x90] sm:$0xff]   ;;  %3478 = vmatprep.subr.bf16.mxu0 %v3815_v28 }
  0xd4   : > { %v811_v19 = vsel %vm708_vm0, %v4230_v37, %v641_v32  ;;  %v3818_v32 = vld [vmem:[%s5083_s3 + $0x28] sm:$0xff]  }
  0xd5   : > { %3479 = vmatpush3.bf16.msra.mxu0 %v3817_v31 }
  0xd6   : > { %v581_v35 = vpop.permute.xlu1 %580 }
  0xd7   : > { %v671_v38 = vpop.permute.xlu0 %670  ;;  %v753_v39 = vsel %vm739_vm1, %v729_v0, %v581_v35  ;;  %v3962_v35 = vmov 0.0   ;;  %v3820_v0 = vld [vmem:[%s5083_s3 + $0x70] sm:$0xff]  }
  0xd8   : > { %v834_v41 = vsel %vm739_vm1, %v811_v19, %v671_v38  ;;  %1647 = vst [vmem:[#allocation2] sm:$0x1] %v3962_v35  ;;  %1648 = vst [vmem:[#allocation2 + $0x18] sm:$0x1] %v3962_v35  ;;  %v3819_v38 = vld [vmem:[%s5083_s3 + $0xd8] sm:$0xff]  }
  0xd9   : > { %1649 = vst [vmem:[#allocation2 + $0x30] sm:$0x1] %v3962_v35  ;;  %1650 = vst [vmem:[#allocation2 + $0x48] sm:$0x1] %v3962_v35  ;;  %v3821_v19 = vld [vmem:[%s5083_s3 + $0x98] sm:$0xff]   ;;  %3480 = vmatprep.subr.bf16.mxu0 %v3819_v38 }
  0xda   : > { %v611_v40 = vpop.permute.xlu1 %610  ;;  %1651 = vst [vmem:[#allocation2 + $0x60] sm:$0x1] %v3962_v35  ;;  %1652 = vst [vmem:[#allocation2 + $0x78] sm:$0x1] %v3962_v35  ;;  %3481 = vmatpush3.bf16.msra.mxu0 %v3821_v19 }
  0xdb   : > { %v701_v44 = vpop.permute.xlu0 %700  ;;  %v780_v45 = vsel %vm760_vm2, %v753_v39, %v611_v40  ;;  %1653 = vst [vmem:[#allocation2 + $0x90] sm:$0x1] %v3962_v35  ;;  %1654 = vst [vmem:[#allocation2 + $0xa8] sm:$0x1] %v3962_v35  ;;  %v3822_v39 = vld [vmem:[%s5083_s3 + $0x30] sm:$0xff]  }
  0xdc   : > { %v860_v47 = vsel %vm760_vm2, %v834_v41, %v701_v44  ;;  %1655 = vst [vmem:[#allocation2 + $0xc0] sm:$0x1] %v3962_v35  ;;  %1656 = vst [vmem:[#allocation2 + $0xd8] sm:$0x1] %v3962_v35 }
  0xdd   : > { %1132 = vmatprep.mubr.bf16.mxu0 %v860_v47  ;;  %1657 = vst [vmem:[#allocation2 + $0x11] sm:$0x1] %v3962_v35  ;;  %1658 = vst [vmem:[#allocation2 + $0x29] sm:$0x1] %v3962_v35  ;;  %v3824_v47 = vld [vmem:[%s5083_s3 + $0x78] sm:$0xff]  }
  0xde   : > { %1133 = vmatmul.mubr.bf16.gmra.mrb[24].mxu0 %v780_v45  ;;  %v553_v26 = vpop.permute.xlu1 %552  ;;  %1659 = vst [vmem:[#allocation2 + $0x41] sm:$0x1] %v3962_v35  ;;  %1660 = vst [vmem:[#allocation2 + $0x59] sm:$0x1] %v3962_v35  ;;  %v3823_v45 = vld [vmem:[%s5083_s3 + $0xe0] sm:$0xff]  }
  0xdf   : > { %v643_v27 = vpop.permute.xlu0 %642  ;;  %v732_v17 = vsel %vm708_vm0, %v4223_v34, %v553_v26  ;;  %1661 = vst [vmem:[#allocation2 + $0x71] sm:$0x1] %v3962_v35  ;;  %1662 = vst [vmem:[#allocation2 + $0x89] sm:$0x1] %v3962_v35  ;;  %3482 = vmatprep.subr.bf16.mxu0 %v3823_v45 }
  0xe0   : > { %v814_v37 = vsel %vm708_vm0, %v4248_v43, %v643_v27  ;;  %1663 = vst [vmem:[#allocation2 + $0xa1] sm:$0x1] %v3962_v35  ;;  %1664 = vst [vmem:[#allocation2 + $0xb9] sm:$0x1] %v3962_v35  ;;  %v3825_v27 = vld [vmem:[%s5083_s3 + $0xa0] sm:$0xff]  }
  0xe1   : > { %1665 = vst [vmem:[#allocation2 + $0xd1] sm:$0x1] %v3962_v35  ;;  %1666 = vst [vmem:[#allocation2 + $0xe9] sm:$0x1] %v3962_v35  ;;  %3483 = vmatpush3.bf16.msra.mxu0 %v3825_v27 }
  0xe2   : > { %v583_v49 = vpop.permute.xlu1 %582 }
  0xe3   : > { %v673_v51 = vpop.permute.xlu0 %672  ;;  %v755_v52 = vsel %vm739_vm1, %v732_v17, %v583_v49  ;;  %v3826_v49 = vld [vmem:[%s5083_s3 + $0x38] sm:$0xff]   ;;  %v3828_v17 = vld [vmem:[%s5083_s3 + $0xa8] sm:$0xff]  }
  0xe4   : > { %v836_v54 = vsel %vm739_vm1, %v814_v37, %v673_v51  ;;  %v3827_v51 = vld [vmem:[%s5083_s3 + $0xe8] sm:$0xff]  }
  0xe5   : > { %3484 = vmatprep.subr.bf16.mxu0 %v3827_v51 }
  0xe6   : > { %v613_v53 = vpop.permute.xlu1 %612  ;;  %3485 = vmatpush3.bf16.msra.mxu0 %v3828_v17 }
  0xe7   : > { %v703_v55 = vpop.permute.xlu0 %702  ;;  %v783_v57 = vsel %vm760_vm2, %v755_v52, %v613_v53 }
  0xe8   : > { %v863_v58 = vsel %vm760_vm2, %v836_v54, %v703_v55  ;;  %v3829_v54 = vld [vmem:[%s5083_s3 + $0xf0] sm:$0xff]  }
  0xe9   : > { %1140 = vmatprep.mubr.bf16.mxu0 %v863_v58  ;;  %3486 = vmatprep.subr.bf16.mxu0 %v3829_v54  ;;  %v3831_v58 = vld [vmem:[%s5083_s3 + $0xf8] sm:$0xff]  }
  0xea   : > { %1141 = vmatmul.mubr.bf16.gmra.mrb[28].mxu0 %v783_v57  ;;  %v555_v59 = vpop.permute.xlu1 %554  ;;  %v3830_v57 = vld [vmem:[%s5083_s3 + $0xb0] sm:$0xff]  }
  0xeb   : > { %v645_v61 = vpop.permute.xlu0 %644  ;;  %v735_v34 = vsel %vm708_vm0, %v4243_v42, %v555_v59  ;;  %v3801_v42 = vld [vmem:[%s5083_s3 + $0x40] sm:$0xff]   ;;  %3487 = vmatpush3.bf16.msra.mxu0 %v3830_v57  ;;  %v3832_v59 = vld [vmem:[%s5083_s3 + $0xb8] sm:$0xff]  }
  0xec   : > { %v817_v43 = vsel %vm708_vm0, %v4266_v50, %v645_v61  ;;  %v3802_v50 = vld [vmem:[%s5083_s3] sm:$0xff]   ;;  %3410 = vmatprep.subr.bf16.mxu1 %v3801_v42  ;;  %3488 = vmatprep.subr.bf16.mxu0 %v3831_v58 }
  0xed   : > { %3411 = vmatpush3.bf16.msra.mxu1 %v3802_v50  ;;  %v3841_v42 = vld [vmem:[%s5083_s3 + $0x1c0] sm:$0xff]  }
  0xee   : > { %v585_v10 = vpop.permute.xlu1 %584  ;;  %3412 = vmatprep.subr.bf16.mxu1 %v3803_v11 }
  0xef   : > { %v675_v36 = vpop.permute.xlu0 %674  ;;  %v757_v62 = vsel %vm739_vm1, %v735_v34, %v585_v10  ;;  %3489 = vmatpush3.bf16.msra.mxu0 %v3832_v59 }
  0xf0   : > { %v838_v63 = vsel %vm739_vm1, %v817_v43, %v675_v36  ;;  %3602 = vmatprep.subr.bf16.mxu0 %v3841_v42 }
  0xf1   : > { %3413 = vmatpush3.bf16.msra.mxu1 %v3804_v13 }
  0xf2   : > { %v615_v1 = vpop.permute.xlu1 %614  ;;  %3414 = vmatprep.subr.bf16.mxu1 %v3807_v16  ;;  %v4448_v40 = vpop.f32.mrb[0].mxu1 }
  0xf3   : > { %v705_v2 = vpop.permute.xlu0 %704  ;;  %v786_v3 = vsel %vm760_vm2, %v757_v62, %v615_v1  ;;  %v1199_v41 = vpop.f32.mrb[1].mxu1 }
  0xf4   : > { %v866_v4 = vsel %vm760_vm2, %v838_v63, %v705_v2  ;;  %v4450_v44 = vpop.f32.mrb[2].mxu1  ;;  %v3833_v2 = vld [vmem:[%s5083_s3 + $0x140] sm:$0xff]  }
  0xf5   : > { %1148 = vmatprep.mubr.bf16.mxu0 %v866_v4  ;;  %3415 = vmatpush3.bf16.msra.mxu1 %v3808_v20  ;;  %v1202_v26 = vpop.f32.mrb[3].mxu1 }
  0xf6   : > { %1149 = vmatmul.mubr.bf16.gmra.mrb[32].mxu0 %v786_v3  ;;  %v557_v6 = vpop.permute.xlu1 %556  ;;  %3416 = vmatprep.subr.bf16.mxu1 %v3809_v22 }
  0xf7   : > { %v647_v7 = vpop.permute.xlu0 %646  ;;  %v738_v8 = vsel %vm708_vm0, %v4259_v46, %v557_v6 }
  0xf8   : > { %v820_v9 = vsel %vm708_vm0, %v4284_v60, %v647_v7 }
  0xf9   : > { %3417 = vmatpush3.bf16.msra.mxu1 %v3810_v5 }
  0xfa   : > { %v587_v33 = vpop.permute.xlu1 %586  ;;  %3418 = vmatprep.subr.bf16.mxu1 %v3812_v24  ;;  %v4470_v37 = vpop.f32.mrb[4].mxu1 }
  0xfb   : > { %v677_v56 = vpop.permute.xlu0 %676  ;;  %v759_v12 = vsel %vm739_vm1, %v738_v8, %v587_v33  ;;  %v4472_v52 = vpop.f32.mrb[5].mxu1 }
  0xfc   : > { %v840_v14 = vsel %vm739_vm1, %v820_v9, %v677_v56  ;;  %v4474_v53 = vpop.f32.mrb[6].mxu1  ;;  %v4523_v9 = vld [vmem:[%s5082_s2] ss:$0 sm:$0xff] }
  0xfd   : > { %3419 = vmatpush3.bf16.msra.mxu1 %v3814_v30  ;;  %v4479_v55 = vpop.f32.mrb[7].mxu1 }
  0xfe   : > { %v617_v46 = vpop.permute.xlu1 %616  ;;  %3420 = vmatprep.subr.bf16.mxu1 %v3816_v29 }
  0xff   : > { %v707_v15 = vpop.permute.xlu0 %706  ;;  %v789_v60 = vsel %vm760_vm2, %v759_v12, %v617_v46 }
 0x100   : > { %v869_v18 = vsel %vm760_vm2, %v840_v14, %v707_v15 }
 0x101   : > { %1156 = vmatprep.mubr.bf16.mxu0 %v869_v18  ;;  %3421 = vmatpush3.bf16.msra.mxu1 %v3818_v32 }
 0x102   : > { %1157 = vmatmul.mubr.bf16.gmra.mrb[36].mxu0 %v789_v60  ;;  %3422 = vmatprep.subr.bf16.mxu1 %v3820_v0  ;;  %v4490_v61 = vpop.f32.mrb[8].mxu1 }
 0x103   : > { %v4492_v34 = vpop.f32.mrb[9].mxu1 }
 0x104   : > { %v4494_v43 = vpop.f32.mrb[10].mxu1 }
 0x105   : > { %3423 = vmatpush3.bf16.msra.mxu1 %v3822_v39  ;;  %v4496_v10 = vpop.f32.mrb[11].mxu1 }
 0x106   : > { %3424 = vmatprep.subr.bf16.mxu1 %v3824_v47 }
 0x109   : > { %3425 = vmatpush3.bf16.msra.mxu1 %v3826_v49 }
 0x10a   : > { %v4498_v36 = vpop.f32.mrb[12].mxu1  ;;  %3538 = vmatprep.subr.bf16.mxu1 %v3833_v2 }
 0x10b   : > { %v4500_v62 = vpop.f32.mrb[13].mxu1 }
 0x10c   : > { %v4502_v63 = vpop.f32.mrb[14].mxu1 }
 0x10d   : > { %v4504_v1 = vpop.f32.mrb[15].mxu1 }
 0x112   : > { %v4509_v3 = vpop.f32.mrb[16].mxu1 }
 0x113   : > { %v4511_v4 = vpop.f32.mrb[17].mxu1 }
 0x114   : > { %v4513_v6 = vpop.f32.mrb[18].mxu1 }
 0x115   : > { %v4515_v7 = vpop.f32.mrb[19].mxu1 }
 0x169   : > { %v3338_v50 = vpop.f32.mrb[0].mxu0 }
 0x16a   : > { %v3339_v8 = vpop.f32.mrb[1].mxu0 }
 0x16b   : > { %v3340_v33 = vadd.f32 %v3339_v8, %v3338_v50  ;;  %v3341_v56 = vpop.f32.mrb[2].mxu0  ;;  %v1501_v8 = vstv %s1500_s11 }
 0x16c   : > { %v3342_v11 = vpop.f32.mrb[3].mxu0  ;;  %vm4549_vm3 = vcmp.eq.s32.totalorder %v1501_v8, 1 }
 0x16d   : > { %v3343_v12 = vadd.f32 %v3342_v11, %v3341_v56  ;;  %v1087_v13 = vadd.f32 %v3340_v33, %v4523_v9  ;;  %vm3913_vm4 = vmpackc.low %vm4549_vm3, %vm4549_vm3 }
 0x16f   : > { %v1200_v14 = vadd.f32 %v1199_v41, %v1087_v13  ;;  %v1090_v46 = vadd.f32 %v3343_v12, %v4523_v9 }
 0x171   : > { %v1278_v15 = vmul.f32 %v1200_v14, %v1200_v14  ;;  %v1203_v60 = vadd.f32 %v1202_v26, %v1090_v46 }
 0x173   : > { %v1298_v16 = vmul.f32 %v1278_v15, %v1200_v14  ;;  %v1279_v18 = vmul.f32 %v1203_v60, %v1203_v60  ;;  %v3836_v15 = vld [vmem:[%s5083_s3 + $0x108] sm:$0xff]  }
 0x175   : > { %v1318_v20 = vmul.f32 0.044715, %v1298_v16  ;;  %v1299_v21 = vmul.f32 %v1279_v18, %v1203_v60  ;;  %v3344_v22 = vpop.f32.mrb[4].mxu0 }
 0x176   : > { %v3345_v48 = vpop.f32.mrb[5].mxu0 }
 0x177   : > { %v1338_v5 = vadd.f32 %v1318_v20, %v1200_v14  ;;  %v1319_v23 = vmul.f32 0.044715, %v1299_v21  ;;  %v3346_v24 = vadd.f32 %v3345_v48, %v3344_v22  ;;  %v3347_v25 = vpop.f32.mrb[6].mxu0 }
 0x178   : > { %v3348_v30 = vpop.f32.mrb[7].mxu0 }
 0x179   : > { %v1358_v28 = vmul.f32 0.7978846, %v1338_v5  ;;  %v1339_v29 = vadd.f32 %v1319_v23, %v1203_v60  ;;  %v1095_v31 = vadd.f32 %v3346_v24, %v4523_v9  ;;  %v3349_v32 = vadd.f32 %v3348_v30, %v3347_v25 }
 0x17b   : > { %3873 = vtanh.f32 %v1358_v28  ;;  %v1359_v35 = vmul.f32 0.7978846, %v1339_v29  ;;  %v4529_v38 = vadd.f32 %v4448_v40, %v1095_v31  ;;  %v1098_v0 = vadd.f32 %v3349_v32, %v4523_v9 }
 0x17d   : > { %3875 = vtanh.f32 %v1359_v35  ;;  %v1280_v19 = vmul.f32 %v4529_v38, %v4529_v38  ;;  %v4535_v39 = vadd.f32 %v4450_v44, %v1098_v0 }
 0x17f   : > { %v1300_v41 = vmul.f32 %v1280_v19, %v4529_v38  ;;  %v1281_v45 = vmul.f32 %v4535_v39, %v4535_v39 }
 0x181   : > { %v1320_v47 = vmul.f32 0.044715, %v1300_v41  ;;  %v1301_v26 = vmul.f32 %v1281_v45, %v4535_v39  ;;  %v3350_v40 = vpop.f32.mrb[8].mxu0 }
 0x182   : > { %v3351_v27 = vpop.f32.mrb[9].mxu0 }
 0x183   : > { %v1340_v49 = vadd.f32 %v1320_v47, %v4529_v38  ;;  %v1321_v51 = vmul.f32 0.044715, %v1301_v26  ;;  %v3352_v17 = vadd.f32 %v3351_v27, %v3350_v40  ;;  %v3353_v54 = vpop.f32.mrb[10].mxu0 }
 0x184   : > { %v3354_v57 = vpop.f32.mrb[11].mxu0 }
 0x185   : > { %v3874_v44 = vpop.eup %3873  ;;  %v1360_v58 = vmul.f32 0.7978846, %v1340_v49  ;;  %v1341_v59 = vadd.f32 %v1321_v51, %v4535_v39  ;;  %v3355_v2 = vadd.f32 %v3354_v57, %v3353_v54  ;;  %v1103_v42 = vadd.f32 %v3352_v17, %v4523_v9 }
 0x186   : > { %v1398_v50 = vadd.f32 1.0, %v3874_v44 }
 0x187   : > { %v3876_v33 = vpop.eup %3875  ;;  %3877 = vtanh.f32 %v1360_v58  ;;  %v1361_v56 = vmul.f32 0.7978846, %v1341_v59  ;;  %v4546_v11 = vadd.f32 %v4472_v52, %v1103_v42  ;;  %v1106_v12 = vadd.f32 %v3355_v2, %v4523_v9 }
 0x188   : > { %v1418_v13 = vmul.f32 0.5, %v1398_v50  ;;  %v1399_v46 = vadd.f32 1.0, %v3876_v33 }
 0x189   : > { %3879 = vtanh.f32 %v1361_v56  ;;  %v1282_v16 = vmul.f32 %v4546_v11, %v4546_v11  ;;  %v4556_v18 = vadd.f32 %v4479_v55, %v1106_v12 }
 0x18a   : > { %v1438_v20 = vmul.f32 %v1418_v13, %v1200_v14  ;;  %v1419_v21 = vmul.f32 0.5, %v1399_v46 }
 0x18b   : > { %v1302_v52 = vmul.f32 %v1282_v16, %v4546_v11  ;;  %v1283_v22 = vmul.f32 %v4556_v18, %v4556_v18 }
 0x18c   : > { %v1627_v48 = vsel %vm4549_vm3, %v1438_v20, 0.0  ;;  %v1439_v5 = vmul.f32 %v1419_v21, %v1203_v60 }
 0x18d   : > { %1667 = vst [vmem:[#allocation2 + $0x1] sm:$0xff] %v1627_v48  ;;  %v1322_v23 = vmul.f32 0.044715, %v1302_v52  ;;  %v1303_v24 = vmul.f32 %v1283_v22, %v4556_v18  ;;  %v3356_v25 = vpop.f32.mrb[12].mxu0 }
 0x18e   : > { %v1628_v55 = vsel %vm4549_vm3, %v1439_v5, 0.0  ;;  %v3357_v30 = vpop.f32.mrb[13].mxu0  ;;  %v3914_v45 = vpack.c.bf16 %v1439_v5, %v1438_v20 }
 0x18f   : > { %1668 = vst [vmem:[#allocation2 + $0x9] sm:$0xff] %v1628_v55  ;;  %v1342_v14 = vadd.f32 %v1322_v23, %v4546_v11  ;;  %v1323_v28 = vmul.f32 0.044715, %v1303_v24  ;;  %v3358_v29 = vadd.f32 %v3357_v30, %v3356_v25  ;;  %v3359_v31 = vpop.f32.mrb[14].mxu0  ;;  %v3838_v30 = vld [vmem:[%s5083_s3 + $0x110] sm:$0xff]  }
 0x190   : > { %v3360_v32 = vpop.f32.mrb[15].mxu0  ;;  %3915 = vmatprep.mubr.msk.bf16.mxu1 %vm3913_vm4, %v3914_v45 }
 0x191   : > { %v3878_v35 = vpop.eup %3877  ;;  %v1362_v0 = vmul.f32 0.7978846, %v1342_v14  ;;  %v1343_v60 = vadd.f32 %v1323_v28, %v4556_v18  ;;  %v1111_v19 = vadd.f32 %v3358_v29, %v4523_v9  ;;  %v3361_v41 = vadd.f32 %v3360_v32, %v3359_v31  ;;  %v3839_v32 = vld [vmem:[%s5083_s3 + $0x158] sm:$0xff]  }
 0x192   : > { %v1400_v47 = vadd.f32 1.0, %v3878_v35 }
 0x193   : > { %v3880_v26 = vpop.eup %3879  ;;  %3881 = vtanh.f32 %v1362_v0  ;;  %v1363_v40 = vmul.f32 0.7978846, %v1343_v60  ;;  %v4573_v27 = vadd.f32 %v4470_v37, %v1111_v19  ;;  %v1114_v49 = vadd.f32 %v3361_v41, %v4523_v9  ;;  %v3834_v37 = vld [vmem:[%s5083_s3 + $0x100] sm:$0xff]  }
 0x194   : > { %v1420_v51 = vmul.f32 0.5, %v1400_v47  ;;  %v1401_v17 = vadd.f32 1.0, %v3880_v26  ;;  %v1687_v59 = vld [vmem:[#allocation2] sm:$0xff] }
 0x195   : > { %3883 = vtanh.f32 %v1363_v40  ;;  %v1284_v54 = vmul.f32 %v4573_v27, %v4573_v27  ;;  %v4579_v57 = vadd.f32 %v4474_v53, %v1114_v49  ;;  %v3835_v53 = vld [vmem:[%s5083_s3 + $0x148] sm:$0xff]  }
 0x196   : > { %v1440_v44 = vmul.f32 %v1420_v51, %v4529_v38  ;;  %v1421_v58 = vmul.f32 0.5, %v1401_v17  ;;  %v1688_v2 = vld [vmem:[#allocation2 + $0x8] sm:$0xff]  ;;  %v3840_v51 = vld [vmem:[%s5083_s3 + $0x118] sm:$0xff]   ;;  %v3842_v17 = vld [vmem:[%s5083_s3 + $0x180] sm:$0xff]  }
 0x197   : > { %v1304_v42 = vmul.f32 %v1284_v54, %v4573_v27  ;;  %v1285_v50 = vmul.f32 %v4579_v57, %v4579_v57  ;;  %v1703_v8 = vpack.c.bf16 %v1688_v2, %v1687_v59  ;;  %v1735_v60 = vld [vmem:[#allocation2 + $0x2] sm:$0xff]  ;;  %v1736_v19 = vld [vmem:[#allocation2 + $0xa] sm:$0xff] }
 0x198   : > { %1669 = vst [vmem:[#allocation2 + $0x19] sm:$0xff] %v1440_v44  ;;  %v1441_v38 = vmul.f32 %v1421_v58, %v4535_v39  ;;  %v3837_v39 = vld [vmem:[%s5083_s3 + $0x150] sm:$0xff]   ;;  %v3845_v58 = vld [vmem:[%s5083_s3 + $0x1c8] sm:$0xff]  }
 0x199   : > { %v1324_v33 = vmul.f32 0.044715, %v1304_v42  ;;  %v1305_v56 = vmul.f32 %v1285_v50, %v4579_v57  ;;  %v3362_v12 = vpop.f32.mrb[16].mxu0  ;;  %2521 = vmatmul.mubr.bf16.vlgmr.msra.gmra.mrb[20].mxu1 %v1703_v8 }
 0x19a   : > { %1670 = vst [vmem:[#allocation2 + $0x21] sm:$0xff] %v1441_v38  ;;  %v3363_v13 = vpop.f32.mrb[17].mxu0  ;;  %v1728_v46 = vpack.c.bf16 %v1441_v38, %v1440_v44  ;;  %3539 = vmatpush3.bf16.msra.mxu1 %v3834_v37  ;;  %v1751_v44 = vpack.c.bf16 %v1736_v19, %v1735_v60 }
 0x19b   : > { %v1344_v16 = vadd.f32 %v1324_v33, %v4573_v27  ;;  %v1325_v20 = vmul.f32 0.044715, %v1305_v56  ;;  %v3364_v21 = vadd.f32 %v3363_v13, %v3362_v12  ;;  %v3365_v52 = vpop.f32.mrb[18].mxu0  ;;  %3540 = vmatprep.subr.bf16.mxu1 %v3835_v53  ;;  %v3844_v53 = vld [vmem:[%s5083_s3 + $0x120] sm:$0xff]   ;;  %v3847_v13 = vld [vmem:[%s5083_s3 + $0x168] sm:$0xff]  }
 0x19c   : > { %v3366_v22 = vpop.f32.mrb[19].mxu0  ;;  %2528 = vmatprep.mubr.bf16.mxu1 %v1728_v46  ;;  %v3849_v46 = vld [vmem:[%s5083_s3 + $0x1d0] sm:$0xff]  }
 0x19d   : > { %v3882_v48 = vpop.eup %3881  ;;  %v1364_v5 = vmul.f32 0.7978846, %v1344_v16  ;;  %v1345_v23 = vadd.f32 %v1325_v20, %v4579_v57  ;;  %v3367_v24 = vadd.f32 %v3366_v22, %v3365_v52  ;;  %v1119_v25 = vadd.f32 %v3364_v21, %v4523_v9 }
 0x19e   : > { %v1402_v55 = vadd.f32 1.0, %v3882_v48  ;;  %3541 = vmatpush3.bf16.msra.mxu1 %v3836_v15  ;;  %v3848_v48 = vld [vmem:[%s5083_s3 + $0x128] sm:$0xff]  }
 0x19f   : > { %v3884_v14 = vpop.eup %3883  ;;  %3885 = vtanh.f32 %v1364_v5  ;;  %v1365_v28 = vmul.f32 0.7978846, %v1345_v23  ;;  %v4606_v29 = vadd.f32 %v4492_v34, %v1119_v25  ;;  %v1122_v31 = vadd.f32 %v3367_v24, %v4523_v9  ;;  %3542 = vmatprep.subr.bf16.mxu1 %v3837_v39  ;;  %v1760_v34 = vld [vmem:[#allocation2 + $0x18] sm:$0xff]  ;;  %v3850_v5 = vld [vmem:[%s5083_s3 + $0x190] sm:$0xff]  }
 0x1a0   : > { %v1422_v35 = vmul.f32 0.5, %v1402_v55  ;;  %v1403_v0 = vadd.f32 1.0, %v3884_v14  ;;  %v3853_v14 = vld [vmem:[%s5083_s3 + $0x1d8] sm:$0xff]  }
 0x1a1   : > { %3887 = vtanh.f32 %v1365_v28  ;;  %v1286_v41 = vmul.f32 %v4606_v29, %v4606_v29  ;;  %v4615_v45 = vadd.f32 %v4496_v10, %v1122_v31  ;;  %v1761_v47 = vld [vmem:[#allocation2 + $0x20] sm:$0xff] }
 0x1a2   : > { %v1442_v26 = vmul.f32 %v1422_v35, %v4546_v11  ;;  %v1423_v40 = vmul.f32 0.5, %v1403_v0  ;;  %v1776_v49 = vpack.c.bf16 %v1761_v47, %v1760_v34  ;;  %3543 = vmatpush3.bf16.msra.mxu1 %v3838_v30  ;;  %v3843_v11 = vld [vmem:[%s5083_s3 + $0x160] sm:$0xff]   ;;  %v3851_v30 = vld [vmem:[%s5083_s3 + $0x170] sm:$0xff]  }
 0x1a3   : > { %v1306_v54 = vmul.f32 %v1286_v41, %v4606_v29  ;;  %v1287_v10 = vmul.f32 %v4615_v45, %v4615_v45  ;;  %3544 = vmatprep.subr.bf16.mxu1 %v3839_v32  ;;  %v1737_v32 = vld [vmem:[#allocation2 + $0x1a] sm:$0xff]  ;;  %v1738_v35 = vld [vmem:[#allocation2 + $0x22] sm:$0xff] }
 0x1a4   : > { %1671 = vst [vmem:[#allocation2 + $0x31] sm:$0xff] %v1442_v26  ;;  %v1443_v59 = vmul.f32 %v1423_v40, %v4556_v18  ;;  %2617 = vmatprep.mubr.bf16.mxu0 %v1776_v49  ;;  %2529 = vmatmul.mubr.bf16.gmra.mrb[24].mxu1 %v1776_v49  ;;  %v3846_v18 = vld [vmem:[%s5083_s3 + $0x188] sm:$0xff]   ;;  %v3854_v40 = vld [vmem:[%s5083_s3 + $0x198] sm:$0xff]  }
 0x1a5   : > { %v1326_v2 = vmul.f32 0.044715, %v1306_v54  ;;  %v1307_v37 = vmul.f32 %v1287_v10, %v4615_v45  ;;  %v3368_v42 = vpop.f32.mrb[20].mxu0  ;;  %2618 = vmatmul.mubr.bf16.vlgmr.msra.gmra.mrb[40].mxu0 %v1751_v44 }
 0x1a6   : > { %1672 = vst [vmem:[#allocation2 + $0x39] sm:$0xff] %v1443_v59  ;;  %v3369_v50 = vpop.f32.mrb[21].mxu0  ;;  %v1729_v8 = vpack.c.bf16 %v1443_v59, %v1442_v26  ;;  %3545 = vmatpush3.bf16.msra.mxu1 %v3840_v51  ;;  %3603 = vmatpush3.bf16.msra.mxu0 %v3842_v17  ;;  %v3852_v26 = vld [vmem:[%s5083_s3 + $0x130] sm:$0xff]   ;;  %v4683_v51 = vpack.c.bf16 %v1738_v35, %v1737_v32  ;;  %v3857_v17 = vld [vmem:[%s5083_s3 + $0x1e0] sm:$0xff]  }
 0x1a7   : > { %v1346_v38 = vadd.f32 %v1326_v2, %v4606_v29  ;;  %v1327_v33 = vmul.f32 0.044715, %v1307_v37  ;;  %v3370_v56 = vadd.f32 %v3369_v50, %v3368_v42  ;;  %v3371_v12 = vpop.f32.mrb[22].mxu0  ;;  %3546 = vmatprep.subr.bf16.mxu1 %v3843_v11  ;;  %3604 = vmatprep.subr.bf16.mxu0 %v3845_v58  ;;  %v3856_v2 = vld [vmem:[%s5083_s3 + $0x138] sm:$0xff]   ;;  %v3863_v35 = vld [vmem:[%s5083_s3 + $0x1b0] sm:$0xff]  }
 0x1a8   : > { %v3372_v15 = vpop.f32.mrb[23].mxu0  ;;  %2536 = vmatprep.mubr.bf16.mxu1 %v1729_v8 }
 0x1a9   : > { %v3886_v16 = vpop.eup %3885  ;;  %v1366_v20 = vmul.f32 0.7978846, %v1346_v38  ;;  %v1347_v21 = vadd.f32 %v1327_v33, %v4615_v45  ;;  %v1127_v52 = vadd.f32 %v3370_v56, %v4523_v9  ;;  %v3373_v39 = vadd.f32 %v3372_v15, %v3371_v12 }
 0x1aa   : > { %v1404_v22 = vadd.f32 1.0, %v3886_v16  ;;  %3547 = vmatpush3.bf16.msra.mxu1 %v3844_v53  ;;  %3605 = vmatpush3.bf16.msra.mxu0 %v3846_v18  ;;  %v4706_v53 = vld [vmem:[%s5083_s3 + $0x200] sm:$0xff]   ;;  %v3860_v18 = vld [vmem:[%s5083_s3 + $0x1e8] sm:$0xff]  }
 0x1ab   : > { %v3888_v23 = vpop.eup %3887  ;;  %3889 = vtanh.f32 %v1366_v20  ;;  %v1367_v24 = vmul.f32 0.7978846, %v1347_v21  ;;  %v4657_v25 = vadd.f32 %v4490_v61, %v1127_v52  ;;  %v1130_v55 = vadd.f32 %v3373_v39, %v4523_v9  ;;  %3548 = vmatprep.subr.bf16.mxu1 %v3847_v13  ;;  %3606 = vmatprep.subr.bf16.mxu0 %v3849_v46  ;;  %v1762_v60 = vld [vmem:[#allocation2 + $0x30] sm:$0xff]  ;;  %v3861_v16 = vld [vmem:[%s5083_s3 + $0x1a8] sm:$0xff]  }
 0x1ac   : > { %v1424_v28 = vmul.f32 0.5, %v1404_v22  ;;  %v1405_v31 = vadd.f32 1.0, %v3888_v23  ;;  %v3862_v22 = vld [vmem:[%s5083_s3 + $0x1f0] sm:$0xff]  }
 0x1ad   : > { %3891 = vtanh.f32 %v1367_v24  ;;  %v1288_v61 = vmul.f32 %v4657_v25, %v4657_v25  ;;  %v4669_v0 = vadd.f32 %v4494_v43, %v1130_v55  ;;  %v1763_v19 = vld [vmem:[#allocation2 + $0x38] sm:$0xff] }
 0x1ae   : > { %v1444_v41 = vmul.f32 %v1424_v28, %v4573_v27  ;;  %v1425_v34 = vmul.f32 0.5, %v1405_v31  ;;  %v4672_v47 = vpack.c.bf16 %v1763_v19, %v1762_v60  ;;  %3549 = vmatpush3.bf16.msra.mxu1 %v3848_v48  ;;  %3607 = vmatpush3.bf16.msra.mxu0 %v3850_v5  ;;  %v3855_v27 = vld [vmem:[%s5083_s3 + $0x178] sm:$0xff]  }
 0x1af   : > { %v1308_v43 = vmul.f32 %v1288_v61, %v4657_v25  ;;  %v1289_v49 = vmul.f32 %v4669_v0, %v4669_v0  ;;  %3550 = vmatprep.subr.bf16.mxu1 %v3851_v30  ;;  %3608 = vmatprep.subr.bf16.mxu0 %v3853_v14  ;;  %v1739_v23 = vld [vmem:[#allocation2 + $0x32] sm:$0xff]  ;;  %v1740_v24 = vld [vmem:[#allocation2 + $0x3a] sm:$0xff] }
 0x1b0   : > { %1673 = vst [vmem:[#allocation2 + $0x49] sm:$0xff] %v1444_v41  ;;  %v1445_v54 = vmul.f32 %v1425_v34, %v4579_v57  ;;  %2625 = vmatprep.mubr.bf16.mxu0 %v4672_v47  ;;  %2537 = vmatmul.mubr.bf16.gmra.mrb[28].mxu1 %v4672_v47  ;;  %v3858_v57 = vld [vmem:[%s5083_s3 + $0x1a0] sm:$0xff]   ;;  %v4738_v19 = vpack.c.bf16 %v1740_v24, %v1739_v23 }
 0x1b1   : > { %v1328_v10 = vmul.f32 0.044715, %v1308_v43  ;;  %v1309_v44 = vmul.f32 %v1289_v49, %v4669_v0  ;;  %v3374_v11 = vpop.f32.mrb[24].mxu0  ;;  %2626 = vmatmul.mubr.bf16.gmra.mrb[44].mxu0 %v4683_v51  ;;  %v3866_v49 = vld [vmem:[%s5083_s3 + $0x1b8] sm:$0xff]  }
 0x1b2   : > { %1674 = vst [vmem:[#allocation2 + $0x51] sm:$0xff] %v1445_v54  ;;  %v3375_v58 = vpop.f32.mrb[25].mxu0  ;;  %v1730_v59 = vpack.c.bf16 %v1445_v54, %v1444_v41  ;;  %3551 = vmatpush3.bf16.msra.mxu1 %v3852_v26  ;;  %3609 = vmatpush3.bf16.msra.mxu0 %v3854_v40 }
 0x1b3   : > { %v1348_v37 = vadd.f32 %v1328_v10, %v4657_v25  ;;  %v1329_v42 = vmul.f32 0.044715, %v1309_v44  ;;  %v3376_v50 = vadd.f32 %v3375_v58, %v3374_v11  ;;  %v3377_v8 = vpop.f32.mrb[26].mxu0  ;;  %3552 = vmatprep.subr.bf16.mxu1 %v3855_v27  ;;  %3610 = vmatprep.subr.bf16.mxu0 %v3857_v17 }
 0x1b4   : > { %v3378_v38 = vpop.f32.mrb[27].mxu0  ;;  %2544 = vmatprep.mubr.bf16.mxu1 %v1730_v59 }
 0x1b5   : > { %v3890_v33 = vpop.eup %3889  ;;  %v1368_v56 = vmul.f32 0.7978846, %v1348_v37  ;;  %v1349_v12 = vadd.f32 %v1329_v42, %v4669_v0  ;;  %v3379_v13 = vadd.f32 %v3378_v38, %v3377_v8  ;;  %v1135_v46 = vadd.f32 %v3376_v50, %v4523_v9 }
 0x1b6   : > { %v1406_v15 = vadd.f32 1.0, %v3890_v33  ;;  %3553 = vmatpush3.bf16.msra.mxu1 %v3856_v2  ;;  %3611 = vmatpush3.bf16.msra.mxu0 %v3858_v57 }
 0x1b7   : > { %v3892_v20 = vpop.eup %3891  ;;  %3893 = vtanh.f32 %v1368_v56  ;;  %v1369_v21 = vmul.f32 0.7978846, %v1349_v12  ;;  %v4717_v52 = vadd.f32 %v4500_v62, %v1135_v46  ;;  %v1138_v39 = vadd.f32 %v3379_v13, %v4523_v9  ;;  %3706 = vmatprep.subr.bf16.mxu1 %v4706_v53  ;;  %3612 = vmatprep.subr.bf16.mxu0 %v3860_v18  ;;  %v1764_v30 = vld [vmem:[#allocation2 + $0x48] sm:$0xff] }
 0x1b8   : > { %v1426_v48 = vmul.f32 0.5, %v1406_v15  ;;  %v1407_v5 = vadd.f32 1.0, %v3892_v20 }
 0x1b9   : > { %3895 = vtanh.f32 %v1369_v21  ;;  %v1290_v55 = vmul.f32 %v4717_v52, %v4717_v52  ;;  %v4727_v62 = vadd.f32 %v4504_v1, %v1138_v39  ;;  %v1765_v14 = vld [vmem:[#allocation2 + $0x50] sm:$0xff]  ;;  %v3865_v1 = vld [vmem:[%s5083_s3 + $0x1f8] sm:$0xff]  }
 0x1ba   : > { %v1446_v28 = vmul.f32 %v1426_v48, %v4606_v29  ;;  %v1427_v31 = vmul.f32 0.5, %v1407_v5  ;;  %v4730_v32 = vpack.c.bf16 %v1765_v14, %v1764_v30  ;;  %3613 = vmatpush3.bf16.msra.mxu0 %v3861_v16  ;;  %v1741_v33 = vld [vmem:[#allocation2 + $0x4a] sm:$0xff]  ;;  %v1742_v56 = vld [vmem:[#allocation2 + $0x52] sm:$0xff] }
 0x1bb   : > { %v1310_v61 = vmul.f32 %v1290_v55, %v4717_v52  ;;  %v1291_v60 = vmul.f32 %v4727_v62, %v4727_v62  ;;  %3614 = vmatprep.subr.bf16.mxu0 %v3862_v22  ;;  %v4772_v22 = vpack.c.bf16 %v1742_v56, %v1741_v33 }
 0x1bc   : > { %1675 = vst [vmem:[#allocation2 + $0x61] sm:$0xff] %v1446_v28  ;;  %v1447_v29 = vmul.f32 %v1427_v31, %v4615_v45  ;;  %2633 = vmatprep.mubr.bf16.mxu0 %v4730_v32  ;;  %2545 = vmatmul.mubr.bf16.gmra.mrb[32].mxu1 %v4730_v32 }
 0x1bd   : > { %v1330_v41 = vmul.f32 0.044715, %v1310_v61  ;;  %v1311_v34 = vmul.f32 %v1291_v60, %v4727_v62  ;;  %v3380_v26 = vpop.f32.mrb[28].mxu0  ;;  %2634 = vmatmul.mubr.bf16.gmra.mrb[48].mxu0 %v4738_v19 }
 0x1be   : > { %1676 = vst [vmem:[#allocation2 + $0x69] sm:$0xff] %v1447_v29  ;;  %v3381_v40 = vpop.f32.mrb[29].mxu0  ;;  %v4748_v43 = vpack.c.bf16 %v1447_v29, %v1446_v28  ;;  %3615 = vmatpush3.bf16.msra.mxu0 %v3863_v35 }
 0x1bf   : > { %v1350_v45 = vadd.f32 %v1330_v41, %v4717_v52  ;;  %v1331_v27 = vmul.f32 0.044715, %v1311_v34  ;;  %v3382_v17 = vadd.f32 %v3381_v40, %v3380_v26  ;;  %v3383_v54 = vpop.f32.mrb[30].mxu0  ;;  %3616 = vmatprep.subr.bf16.mxu0 %v3865_v1 }
 0x1c0   : > { %v3384_v10 = vpop.f32.mrb[31].mxu0  ;;  %2552 = vmatprep.mubr.bf16.mxu1 %v4748_v43 }
 0x1c1   : > { %v3894_v44 = vpop.eup %3893  ;;  %v1370_v11 = vmul.f32 0.7978846, %v1350_v45  ;;  %v1351_v58 = vadd.f32 %v1331_v27, %v4727_v62  ;;  %v1143_v59 = vadd.f32 %v3382_v17, %v4523_v9  ;;  %v3385_v2 = vadd.f32 %v3384_v10, %v3383_v54 }
 0x1c2   : > { %v1408_v57 = vadd.f32 1.0, %v3894_v44  ;;  %3617 = vmatpush3.bf16.msra.mxu0 %v3866_v49 }
 0x1c3   : > { %v3896_v37 = vpop.eup %3895  ;;  %3897 = vtanh.f32 %v1370_v11  ;;  %v1371_v42 = vmul.f32 0.7978846, %v1351_v58  ;;  %v4758_v50 = vadd.f32 %v4498_v36, %v1143_v59  ;;  %v1146_v8 = vadd.f32 %v3385_v2, %v4523_v9  ;;  %v1766_v46 = vld [vmem:[#allocation2 + $0x60] sm:$0xff] }
 0x1c4   : > { %v1428_v18 = vmul.f32 0.5, %v1408_v57  ;;  %v1409_v38 = vadd.f32 1.0, %v3896_v37 }
 0x1c5   : > { %3899 = vtanh.f32 %v1371_v42  ;;  %v1292_v12 = vmul.f32 %v4758_v50, %v4758_v50  ;;  %v4764_v13 = vadd.f32 %v4502_v63, %v1146_v8  ;;  %v1767_v15 = vld [vmem:[#allocation2 + $0x68] sm:$0xff] }
 0x1c6   : > { %v1448_v16 = vmul.f32 %v1428_v18, %v4657_v25  ;;  %v1429_v20 = vmul.f32 0.5, %v1409_v38  ;;  %v4767_v36 = vpack.c.bf16 %v1767_v15, %v1766_v46  ;;  %v1743_v27 = vld [vmem:[#allocation2 + $0x62] sm:$0xff]  ;;  %v1744_v17 = vld [vmem:[#allocation2 + $0x6a] sm:$0xff] }
 0x1c7   : > { %v1312_v21 = vmul.f32 %v1292_v12, %v4758_v50  ;;  %v1293_v39 = vmul.f32 %v4764_v13, %v4764_v13  ;;  %v4800_v37 = vpack.c.bf16 %v1744_v17, %v1743_v27 }
 0x1c8   : > { %1677 = vst [vmem:[#allocation2 + $0x79] sm:$0xff] %v1448_v16  ;;  %v1449_v48 = vmul.f32 %v1429_v20, %v4669_v0  ;;  %2641 = vmatprep.mubr.bf16.mxu0 %v4767_v36  ;;  %2553 = vmatmul.mubr.bf16.gmra.mrb[36].mxu1 %v4767_v36 }
 0x1c9   : > { %v1332_v63 = vmul.f32 0.044715, %v1312_v21  ;;  %v1313_v25 = vmul.f32 %v1293_v39, %v4764_v13  ;;  %v3386_v5 = vpop.f32.mrb[32].mxu0  ;;  %2642 = vmatmul.mubr.bf16.gmra.mrb[52].mxu0 %v4772_v22 }
 0x1ca   : > { %1678 = vst [vmem:[#allocation2 + $0x81] sm:$0xff] %v1449_v48  ;;  %v3387_v23 = vpop.f32.mrb[33].mxu0  ;;  %v4779_v24 = vpack.c.bf16 %v1449_v48, %v1448_v16 }
 0x1cb   : > { %v1352_v55 = vadd.f32 %v1332_v63, %v4758_v50  ;;  %v1333_v30 = vmul.f32 0.044715, %v1313_v25  ;;  %v3388_v14 = vadd.f32 %v3387_v23, %v3386_v5  ;;  %v3389_v28 = vpop.f32.mrb[34].mxu0 }
 0x1cc   : > { %v3390_v0 = vpop.f32.mrb[35].mxu0  ;;  %2560 = vmatprep.mubr.bf16.mxu1 %v4779_v24 }
 0x1cd   : > { %v3898_v31 = vpop.eup %3897  ;;  %v1372_v35 = vmul.f32 0.7978846, %v1352_v55  ;;  %v1353_v61 = vadd.f32 %v1333_v30, %v4764_v13  ;;  %v3391_v60 = vadd.f32 %v3390_v0, %v3389_v28  ;;  %v1151_v1 = vadd.f32 %v3388_v14, %v4523_v9 }
 0x1ce   : > { %v1410_v29 = vadd.f32 1.0, %v3898_v31 }
 0x1cf   : > { %v3900_v41 = vpop.eup %3899  ;;  %3901 = vtanh.f32 %v1372_v35  ;;  %v1373_v34 = vmul.f32 0.7978846, %v1353_v61  ;;  %v4786_v26 = vadd.f32 %v4511_v4, %v1151_v1  ;;  %v1154_v40 = vadd.f32 %v3391_v60, %v4523_v9  ;;  %v1768_v44 = vld [vmem:[#allocation2 + $0x78] sm:$0xff] }
 0x1d0   : > { %v1430_v49 = vmul.f32 0.5, %v1410_v29  ;;  %v1411_v45 = vadd.f32 1.0, %v3900_v41 }
 0x1d1   : > { %3903 = vtanh.f32 %v1373_v34  ;;  %v1294_v54 = vmul.f32 %v4786_v26, %v4786_v26  ;;  %v4792_v10 = vadd.f32 %v4515_v7, %v1154_v40  ;;  %v1769_v11 = vld [vmem:[#allocation2 + $0x80] sm:$0xff] }
 0x1d2   : > { %v1450_v58 = vmul.f32 %v1430_v49, %v4717_v52  ;;  %v1431_v59 = vmul.f32 0.5, %v1411_v45  ;;  %v4795_v4 = vpack.c.bf16 %v1769_v11, %v1768_v44  ;;  %v1745_v14 = vld [vmem:[#allocation2 + $0x7a] sm:$0xff]  ;;  %v1746_v28 = vld [vmem:[#allocation2 + $0x82] sm:$0xff] }
 0x1d3   : > { %v1314_v2 = vmul.f32 %v1294_v54, %v4786_v26  ;;  %v1295_v57 = vmul.f32 %v4792_v10, %v4792_v10  ;;  %v4828_v41 = vpack.c.bf16 %v1746_v28, %v1745_v14 }
 0x1d4   : > { %1679 = vst [vmem:[#allocation2 + $0x91] sm:$0xff] %v1450_v58  ;;  %v1451_v42 = vmul.f32 %v1431_v59, %v4727_v62  ;;  %2649 = vmatprep.mubr.bf16.mxu0 %v4795_v4  ;;  %2561 = vmatmul.mubr.bf16.gmra.mrb[40].mxu1 %v4795_v4 }
 0x1d5   : > { %v1334_v7 = vmul.f32 0.044715, %v1314_v2  ;;  %v1315_v52 = vmul.f32 %v1295_v57, %v4792_v10  ;;  %v3392_v8 = vpop.f32.mrb[36].mxu0  ;;  %2650 = vmatmul.mubr.bf16.gmra.mrb[56].mxu0 %v4800_v37 }
 0x1d6   : > { %1680 = vst [vmem:[#allocation2 + $0x99] sm:$0xff] %v1451_v42  ;;  %v3393_v18 = vpop.f32.mrb[37].mxu0  ;;  %v4807_v38 = vpack.c.bf16 %v1451_v42, %v1450_v58 }
 0x1d7   : > { %v1354_v33 = vadd.f32 %v1334_v7, %v4786_v26  ;;  %v1335_v56 = vmul.f32 0.044715, %v1315_v52  ;;  %v3394_v12 = vadd.f32 %v3393_v18, %v3392_v8  ;;  %v3395_v46 = vpop.f32.mrb[38].mxu0 }
 0x1d8   : > { %v3396_v62 = vpop.f32.mrb[39].mxu0  ;;  %2568 = vmatprep.mubr.bf16.mxu1 %v4807_v38 }
 0x1d9   : > { %v3902_v15 = vpop.eup %3901  ;;  %v1374_v16 = vmul.f32 0.7978846, %v1354_v33  ;;  %v1355_v20 = vadd.f32 %v1335_v56, %v4792_v10  ;;  %v1159_v21 = vadd.f32 %v3394_v12, %v4523_v9  ;;  %v3397_v39 = vadd.f32 %v3396_v62, %v3395_v46  ;;  %v1785_v12 = vld [vmem:[#allocation2 + $0x21] sm:$0xff]  ;;  %v1784_v62 = vld [vmem:[#allocation2 + $0x19] sm:$0xff] }
 0x1da   : > { %v1412_v48 = vadd.f32 1.0, %v3902_v15 }
 0x1db   : > { %v3904_v63 = vpop.eup %3903  ;;  %3905 = vtanh.f32 %v1374_v16  ;;  %v1375_v25 = vmul.f32 0.7978846, %v1355_v20  ;;  %v4814_v5 = vadd.f32 %v4509_v3, %v1159_v21  ;;  %v1162_v23 = vadd.f32 %v3397_v39, %v4523_v9  ;;  %v1770_v35 = vld [vmem:[#allocation2 + $0x90] sm:$0xff] }
 0x1dc   : > { %v1432_v55 = vmul.f32 0.5, %v1412_v48  ;;  %v1413_v30 = vadd.f32 1.0, %v3904_v63  ;;  %v1545_v16 = vstv %s1544_s16  ;;  %v1800_v20 = vpack.c.bf16 %v1785_v12, %v1784_v62  ;;  %s244_s16 = sadd.s32 %s3090_s18, %s5103_s15 }
 0x1dd   : > { %3907 = vtanh.f32 %v1375_v25  ;;  %v1296_v0 = vmul.f32 %v4814_v5, %v4814_v5  ;;  %v4820_v31 = vadd.f32 %v4513_v6, %v1162_v23  ;;  %v1771_v61 = vld [vmem:[#allocation2 + $0x98] sm:$0xff]  ;;  %vm4856_vm5 = vcmp.eq.s32.totalorder %v1545_v16, 1  ;;  %s3091_s25 = sshll.u32 %s244_s16, 3 }
 0x1de   : > { %v1452_v60 = vmul.f32 %v1432_v55, %v4758_v50  ;;  %v1433_v1 = vmul.f32 0.5, %v1413_v30  ;;  %v4823_v3 = vpack.c.bf16 %v1771_v61, %v1770_v35  ;;  %v1747_v2 = vld [vmem:[#allocation2 + $0x92] sm:$0xff]  ;;  %v1748_v57 = vld [vmem:[#allocation2 + $0x9a] sm:$0xff]  ;;  %vm3916_vm6 = vmpackc.low %vm4856_vm5, %vm4856_vm5  ;;  %s5021_s30 = scalar_lea.vmem %s5085_s5, %s3091_s25 }
 0x1df   : > { %v1316_v9 = vmul.f32 %v1296_v0, %v4814_v5  ;;  %v1297_v29 = vmul.f32 %v4820_v31, %v4820_v31  ;;  %v4844_v33 = vpack.c.bf16 %v1748_v57, %v1747_v2  ;;  %v1858_v30 = vld [vmem:[#allocation2 + $0x39] sm:$0xff]  ;;  %v3867_v35 = vld [vmem:[%s5083_s3 + $0x210] sm:$0xff]  }
 0x1e0   : > { %1681 = vst [vmem:[#allocation2 + $0xa9] sm:$0xff] %v1452_v60  ;;  %v1453_v34 = vmul.f32 %v1433_v1, %v4764_v13  ;;  %2657 = vmatprep.mubr.bf16.mxu0 %v4823_v3  ;;  %2569 = vmatmul.mubr.bf16.gmra.mrb[44].mxu1 %v4823_v3 }
 0x1e1   : > { %v1336_v6 = vmul.f32 0.044715, %v1316_v9  ;;  %v1317_v50 = vmul.f32 %v1297_v29, %v4820_v31  ;;  %2658 = vmatmul.mubr.bf16.gmra.mrb[60].mxu0 %v4828_v41  ;;  %v3868_v29 = vld [vmem:[%s5083_s3 + $0x218] sm:$0xff]  }
 0x1e2   : > { %1682 = vst [vmem:[#allocation2 + $0xb1] sm:$0xff] %v1453_v34  ;;  %v4835_v40 = vpack.c.bf16 %v1453_v34, %v1452_v60  ;;  %v1857_v60 = vld [vmem:[#allocation2 + $0x31] sm:$0xff]  ;;  %v3869_v34 = vld [vmem:[%s5083_s3 + $0x220] sm:$0xff]  }
 0x1e3   : > { %v1356_v49 = vadd.f32 %v1336_v6, %v4814_v5  ;;  %v1337_v45 = vmul.f32 0.044715, %v1317_v50  ;;  %v1859_v6 = vld [vmem:[#allocation2 + $0x49] sm:$0xff] }
 0x1e4   : > { %2576 = vmatprep.mubr.bf16.mxu1 %v4835_v40 }
 0x1e5   : > { %v3906_v27 = vpop.eup %3905  ;;  %v1376_v13 = vmul.f32 0.7978846, %v1356_v49  ;;  %v1357_v17 = vadd.f32 %v1337_v45, %v4820_v31  ;;  %v3870_v49 = vld [vmem:[%s5083_s3 + $0x228] sm:$0xff]   ;;  %v3871_v45 = vld [vmem:[%s5083_s3 + $0x230] sm:$0xff]  }
 0x1e6   : > { %v1414_v54 = vadd.f32 1.0, %v3906_v27 }
 0x1e7   : > { %v3908_v44 = vpop.eup %3907  ;;  %3909 = vtanh.f32 %v1376_v13  ;;  %v1377_v11 = vmul.f32 0.7978846, %v1357_v17  ;;  %v1772_v42 = vld [vmem:[#allocation2 + $0xa8] sm:$0xff] }
 0x1e8   : > { %v1434_v58 = vmul.f32 0.5, %v1414_v54  ;;  %v1415_v59 = vadd.f32 1.0, %v3908_v44 }
 0x1e9   : > { %3911 = vtanh.f32 %v1377_v11  ;;  %v1773_v7 = vld [vmem:[#allocation2 + $0xb0] sm:$0xff]  ;;  %v4930_v11 = vld [vmem:[%s5084_s4] ss:$0 sm:$0xff] }
 0x1ea   : > { %v1454_v52 = vmul.f32 %v1434_v58, %v4786_v26  ;;  %v1435_v8 = vmul.f32 0.5, %v1415_v59  ;;  %v4842_v18 = vpack.c.bf16 %v1773_v7, %v1772_v42  ;;  %v1749_v63 = vld [vmem:[#allocation2 + $0xaa] sm:$0xff] }
 0x1ec   : > { %1683 = vst [vmem:[#allocation2 + $0xc1] sm:$0xff] %v1454_v52  ;;  %v1455_v56 = vmul.f32 %v1435_v8, %v4792_v10  ;;  %2665 = vmatprep.mubr.bf16.mxu0 %v4842_v18  ;;  %2577 = vmatmul.mubr.bf16.gmra.mrb[48].mxu1 %v4842_v18  ;;  %v3864_v10 = vld [vmem:[%s5083_s3 + $0x208] sm:$0xff]  }
 0x1ed   : > { %2666 = vmatmul.mubr.bf16.gmra.mrb[64].mxu0 %v4844_v33  ;;  %2714 = vmatprep.mubr.bf16.mxu1 %v4683_v51  ;;  %v1750_v51 = vld [vmem:[#allocation2 + $0xb2] sm:$0xff] }
 0x1ee   : > { %1684 = vst [vmem:[#allocation2 + $0xc9] sm:$0xff] %v1455_v56  ;;  %v4851_v26 = vpack.c.bf16 %v1455_v56, %v1454_v52  ;;  %v4870_v61 = vpack.c.bf16 %v1750_v51, %v1749_v63 }
 0x1f1   : > { %v3910_v46 = vpop.eup %3909 }
 0x1f2   : > { %v1416_v15 = vadd.f32 1.0, %v3910_v46 }
 0x1f3   : > { %v3912_v21 = vpop.eup %3911  ;;  %v1774_v23 = vld [vmem:[#allocation2 + $0xc0] sm:$0xff] }
 0x1f4   : > { %v1436_v39 = vmul.f32 0.5, %v1416_v15  ;;  %v1417_v48 = vadd.f32 1.0, %v3912_v21  ;;  %2715 = vmatmul.mubr.bf16.vlgmr.msra.gmra.mrb[52].mxu1 %v1800_v20 }
 0x1f5   : > { %3707 = vmatpush3.bf16.msra.mxu1 %v4706_v53  ;;  %2722 = vmatprep.mubr.bf16.mxu1 %v4738_v19  ;;  %v1775_v55 = vld [vmem:[#allocation2 + $0xc8] sm:$0xff] }
 0x1f6   : > { %v4863_v14 = vmul.f32 %v1436_v39, %v4814_v5  ;;  %v1437_v28 = vmul.f32 0.5, %v1417_v48  ;;  %v4865_v0 = vpack.c.bf16 %v1775_v55, %v1774_v23  ;;  %3708 = vmatprep.subr.bf16.mxu1 %v3864_v10  ;;  %v1873_v5 = vpack.c.bf16 %v1858_v30, %v1857_v60 }
 0x1f8   : > { %v1645_v53 = vsel %vm4856_vm5, %v4863_v14, 0.0  ;;  %v1457_v1 = vmul.f32 %v1437_v28, %v4820_v31  ;;  %2673 = vmatprep.mubr.bf16.mxu0 %v4865_v0  ;;  %v1860_v31 = vld [vmem:[#allocation2 + $0x51] sm:$0xff] }
 0x1f9   : > { %1685 = vst [vmem:[#allocation2 + $0xd9] sm:$0xff] %v1645_v53  ;;  %2674 = vmatmul.mubr.bf16.gmra.mrb[68].mxu0 %v4870_v61  ;;  %3709 = vmatpush3.bf16.msra.mxu1 %v3864_v10  ;;  %v1874_v50 = vpack.c.bf16 %v1860_v31, %v1859_v6 }
 0x1fa   : > { %v1646_v9 = vsel %vm4856_vm5, %v1457_v1, 0.0  ;;  %2811 = vmatprep.mubr.bf16.mxu0 %v1873_v5  ;;  %3710 = vmatprep.subr.bf16.mxu1 %v3867_v35 }
 0x1fb   : > { %1686 = vst [vmem:[#allocation2 + $0xe1] sm:$0xff] %v1646_v9 }
 0x1fc   : > { %2723 = vmatmul.mubr.bf16.gmra.mrb[56].mxu1 %v1873_v5 }
 0x1fd   : > { %2730 = vmatprep.mubr.bf16.mxu1 %v4772_v22  ;;  %3711 = vmatpush3.bf16.msra.mxu1 %v3867_v35 }
 0x1fe   : > { %3712 = vmatprep.subr.bf16.mxu1 %v3868_v29 }
 0x201   : > { %2812 = vmatmul.mubr.bf16.vlgmr.msra.gmra.mrb[72].mxu0 %v4672_v47  ;;  %3713 = vmatpush3.bf16.msra.mxu1 %v3868_v29  ;;  %v3872_v47 = vld [vmem:[%s5083_s3 + $0x238] sm:$0xff]  }
 0x202   : > { %2819 = vmatprep.mubr.bf16.mxu0 %v1874_v50  ;;  %3714 = vmatprep.subr.bf16.mxu1 %v3869_v34 }
 0x204   : > { %2731 = vmatmul.mubr.bf16.gmra.mrb[60].mxu1 %v1874_v50 }
 0x205   : > { %2738 = vmatprep.mubr.bf16.mxu1 %v4800_v37  ;;  %3715 = vmatpush3.bf16.msra.mxu1 %v3869_v34 }
 0x206   : > { %3716 = vmatprep.subr.bf16.mxu1 %v3870_v49 }
 0x209   : > { %2820 = vmatmul.mubr.bf16.gmra.mrb[76].mxu0 %v4730_v32  ;;  %3717 = vmatpush3.bf16.msra.mxu1 %v3870_v49  ;;  %v1822_v32 = vld [vmem:[#allocation2 + $0xc2] sm:$0xff] }
 0x20a   : > { %2827 = vmatprep.mubr.bf16.mxu0 %v4748_v43  ;;  %3718 = vmatprep.subr.bf16.mxu1 %v3871_v45 }
 0x20c   : > { %2739 = vmatmul.mubr.bf16.gmra.mrb[64].mxu1 %v4748_v43  ;;  %v1823_v43 = vld [vmem:[#allocation2 + $0xca] sm:$0xff] }
 0x20d   : > { %2746 = vmatprep.mubr.bf16.mxu1 %v4828_v41  ;;  %3719 = vmatpush3.bf16.msra.mxu1 %v3871_v45 }
 0x20e   : > { %3720 = vmatprep.subr.bf16.mxu1 %v3872_v47 }
 0x211   : > { %2828 = vmatmul.mubr.bf16.gmra.mrb[80].mxu0 %v4767_v36  ;;  %3721 = vmatpush3.bf16.msra.mxu1 %v3872_v47  ;;  %v1831_v36 = vpack.c.bf16 %v1823_v43, %v1822_v32 }
 0x212   : > { %2835 = vmatprep.mubr.bf16.mxu0 %v4779_v24 }
 0x214   : > { %2747 = vmatmul.mubr.bf16.gmra.mrb[68].mxu1 %v4779_v24  ;;  %v3917_v24 = vpack.c.bf16 %v1457_v1, %v4863_v14 }
 0x215   : > { %2754 = vmatprep.mubr.bf16.mxu1 %v4844_v33 }
 0x219   : > { %2836 = vmatmul.mubr.bf16.gmra.mrb[84].mxu0 %v4795_v4  ;;  %v1848_v4 = vld [vmem:[#allocation2 + $0xe0] sm:$0xff] }
 0x21a   : > { %2843 = vmatprep.mubr.bf16.mxu0 %v4807_v38 }
 0x21c   : > { %2755 = vmatmul.mubr.bf16.gmra.mrb[72].mxu1 %v4807_v38  ;;  %v1847_v38 = vld [vmem:[#allocation2 + $0xd8] sm:$0xff] }
 0x21d   : > { %2762 = vmatprep.mubr.bf16.mxu1 %v4870_v61 }
 0x221   : > { %2844 = vmatmul.mubr.bf16.gmra.mrb[88].mxu0 %v4823_v3  ;;  %v1856_v3 = vpack.c.bf16 %v1848_v4, %v1847_v38 }
 0x222   : > { %2851 = vmatprep.mubr.bf16.mxu0 %v4835_v40 }
 0x224   : > { %2763 = vmatmul.mubr.bf16.gmra.mrb[76].mxu1 %v4835_v40  ;;  %v1896_v40 = vld [vmem:[#allocation2 + $0xe2] sm:$0xff] }
 0x225   : > { %2770 = vmatprep.mubr.bf16.mxu1 %v1831_v36 }
 0x229   : > { %2852 = vmatmul.mubr.bf16.gmra.mrb[92].mxu0 %v4842_v18 }
 0x22a   : > { %2859 = vmatprep.mubr.bf16.mxu0 %v4851_v26 }
 0x22c   : > { %2771 = vmatmul.mubr.bf16.gmra.mrb[80].mxu1 %v4851_v26 }
 0x22d   : > { %3722 = vmatprep.mubr.bf16.mxu1 %v4738_v19  ;;  %v1895_v19 = vld [vmem:[#allocation2 + $0xda] sm:$0xff] }
 0x22e   : > { %v1904_v27 = vpack.c.bf16 %v1896_v40, %v1895_v19 }
 0x231   : > { %2860 = vmatmul.mubr.bf16.gmra.mrb[96].mxu0 %v4865_v0 }
 0x232   : > { %3918 = vmatprep.mubr.msk.bf16.mxu0 %vm3916_vm6, %v3917_v24 }
 0x234   : > { %3723 = vmatmul.mubr.bf16.vlgmr.msra.gmra.mrb[84].mxu1 %v4772_v22 }
 0x235   : > { %3726 = vmatprep.mubr.bf16.mxu1 %v4800_v37 }
 0x239   : > { %2868 = vmatmul.mubr.bf16.gmra.mrb[100].mxu0 %v1856_v3 }
 0x23c   : > { %3727 = vmatmul.mubr.bf16.gmra.mrb[88].mxu1 %v4828_v41 }
 0x23d   : > { %3730 = vmatprep.mubr.bf16.mxu1 %v4844_v33 }
 0x244   : > { %3731 = vmatmul.mubr.bf16.gmra.mrb[92].mxu1 %v4870_v61 }
 0x245   : > { %3734 = vmatprep.mubr.bf16.mxu1 %v1831_v36 }
 0x24c   : > { %3735 = vmatmul.mubr.bf16.gmra.mrb[96].mxu1 %v1904_v27 }
 0x26c   : > { %v3426_v13 = vpop.f32.mrb[20].mxu1 }
 0x26d   : > { %v3427_v17 = vpop.f32.mrb[21].mxu1 }
 0x26e   : > { %v3428_v22 = vadd.f32 %v3427_v17, %v3426_v13  ;;  %v3429_v54 = vpop.f32.mrb[22].mxu1 }
 0x26f   : > { %v3430_v44 = vpop.f32.mrb[23].mxu1 }
 0x270   : > { %v3431_v37 = vadd.f32 %v3430_v44, %v3429_v54  ;;  %v2523_v7 = vadd.f32 %v3428_v22, %v4930_v11 }
 0x272   : > { %v2526_v26 = vadd.f32 %v3431_v37, %v4930_v11 }
 0x277   : > { %v3432_v41 = vpop.f32.mrb[24].mxu1 }
 0x278   : > { %v3490_v58 = vpop.f32.mrb[40].mxu0  ;;  %v3433_v59 = vpop.f32.mrb[25].mxu1 }
 0x279   : > { %v3434_v2 = vadd.f32 %v3433_v59, %v3432_v41  ;;  %v3491_v57 = vpop.f32.mrb[41].mxu0  ;;  %v3435_v42 = vpop.f32.mrb[26].mxu1 }
 0x27a   : > { %v3492_v52 = vadd.f32 %v3491_v57, %v3490_v58  ;;  %v3493_v8 = vpop.f32.mrb[42].mxu0  ;;  %v3436_v18 = vpop.f32.mrb[27].mxu1 }
 0x27b   : > { %v3437_v33 = vadd.f32 %v3436_v18, %v3435_v42  ;;  %v3494_v56 = vpop.f32.mrb[43].mxu0  ;;  %v2531_v48 = vadd.f32 %v3434_v2, %v4930_v11 }
 0x27c   : > { %v4934_v12 = vadd.f32 %v3492_v52, %v2523_v7  ;;  %v3495_v46 = vadd.f32 %v3494_v56, %v3493_v8 }
 0x27d   : > { %v2534_v30 = vadd.f32 %v3437_v33, %v4930_v11 }
 0x27e   : > { %v4936_v62 = vadd.f32 %v3495_v46, %v2526_v26 }
 0x283   : > { %v3438_v15 = vpop.f32.mrb[28].mxu1 }
 0x284   : > { %v3496_v16 = vpop.f32.mrb[44].mxu0  ;;  %v3439_v20 = vpop.f32.mrb[29].mxu1 }
 0x285   : > { %v3440_v10 = vadd.f32 %v3439_v20, %v3438_v15  ;;  %v3497_v21 = vpop.f32.mrb[45].mxu0  ;;  %v3441_v39 = vpop.f32.mrb[30].mxu1 }
 0x286   : > { %v3498_v63 = vadd.f32 %v3497_v21, %v3496_v16  ;;  %v3499_v51 = vpop.f32.mrb[46].mxu0  ;;  %v3442_v25 = vpop.f32.mrb[31].mxu1 }
 0x287   : > { %v3443_v23 = vadd.f32 %v3442_v25, %v3441_v39  ;;  %v3500_v55 = vpop.f32.mrb[47].mxu0  ;;  %v2539_v9 = vadd.f32 %v3440_v10, %v4930_v11 }
 0x288   : > { %v4940_v14 = vadd.f32 %v3498_v63, %v2531_v48  ;;  %v3501_v28 = vadd.f32 %v3500_v55, %v3499_v51 }
 0x289   : > { %v2542_v49 = vadd.f32 %v3443_v23, %v4930_v11 }
 0x28a   : > { %v4942_v0 = vadd.f32 %v3501_v28, %v2534_v30 }
 0x28f   : > { %v3444_v35 = vpop.f32.mrb[32].mxu1 }
 0x290   : > { %v3502_v61 = vpop.f32.mrb[48].mxu0  ;;  %v3445_v60 = vpop.f32.mrb[33].mxu1 }
 0x291   : > { %v3446_v53 = vadd.f32 %v3445_v60, %v3444_v35  ;;  %v3503_v1 = vpop.f32.mrb[49].mxu0  ;;  %v3447_v5 = vpop.f32.mrb[34].mxu1 }
 0x292   : > { %v3504_v29 = vadd.f32 %v3503_v1, %v3502_v61  ;;  %v3505_v31 = vpop.f32.mrb[50].mxu0  ;;  %v3448_v34 = vpop.f32.mrb[35].mxu1 }
 0x293   : > { %v3449_v6 = vadd.f32 %v3448_v34, %v3447_v5  ;;  %v3506_v50 = vpop.f32.mrb[51].mxu0  ;;  %v2547_v19 = vadd.f32 %v3446_v53, %v4930_v11 }
 0x294   : > { %v4946_v45 = vadd.f32 %v3504_v29, %v2539_v9  ;;  %v3507_v47 = vadd.f32 %v3506_v50, %v3505_v31 }
 0x295   : > { %v2550_v54 = vadd.f32 %v3449_v6, %v4930_v11 }
 0x296   : > { %v4948_v32 = vadd.f32 %v3507_v47, %v2542_v49 }
 0x29b   : > { %v3450_v43 = vpop.f32.mrb[36].mxu1 }
 0x29c   : > { %v3508_v36 = vpop.f32.mrb[52].mxu0  ;;  %v3451_v24 = vpop.f32.mrb[37].mxu1 }
 0x29d   : > { %v3452_v4 = vadd.f32 %v3451_v24, %v3450_v43  ;;  %v3509_v38 = vpop.f32.mrb[53].mxu0  ;;  %v3453_v3 = vpop.f32.mrb[38].mxu1 }
 0x29e   : > { %v3510_v40 = vadd.f32 %v3509_v38, %v3508_v36  ;;  %v3511_v27 = vpop.f32.mrb[54].mxu0  ;;  %v3454_v13 = vpop.f32.mrb[39].mxu1 }
 0x29f   : > { %v3455_v17 = vadd.f32 %v3454_v13, %v3453_v3  ;;  %v3512_v22 = vpop.f32.mrb[55].mxu0  ;;  %v2555_v52 = vadd.f32 %v3452_v4, %v4930_v11 }
 0x2a0   : > { %v4952_v44 = vadd.f32 %v3510_v40, %v2547_v19  ;;  %v3513_v37 = vadd.f32 %v3512_v22, %v3511_v27 }
 0x2a1   : > { %v2558_v46 = vadd.f32 %v3455_v17, %v4930_v11 }
 0x2a2   : > { %v4954_v41 = vadd.f32 %v3513_v37, %v2550_v54 }
 0x2a7   : > { %v3456_v58 = vpop.f32.mrb[40].mxu1 }
 0x2a8   : > { %v3514_v59 = vpop.f32.mrb[56].mxu0  ;;  %v3457_v2 = vpop.f32.mrb[41].mxu1 }
 0x2a9   : > { %v3458_v57 = vadd.f32 %v3457_v2, %v3456_v58  ;;  %v3515_v42 = vpop.f32.mrb[57].mxu0  ;;  %v3459_v7 = vpop.f32.mrb[42].mxu1 }
 0x2aa   : > { %v3516_v8 = vadd.f32 %v3515_v42, %v3514_v59  ;;  %v3517_v18 = vpop.f32.mrb[58].mxu0  ;;  %v3460_v33 = vpop.f32.mrb[43].mxu1 }
 0x2ab   : > { %v3461_v56 = vadd.f32 %v3460_v33, %v3459_v7  ;;  %v3518_v26 = vpop.f32.mrb[59].mxu0  ;;  %v2563_v25 = vadd.f32 %v3458_v57, %v4930_v11 }
 0x2ac   : > { %v4958_v15 = vadd.f32 %v3516_v8, %v2555_v52  ;;  %v3519_v16 = vadd.f32 %v3518_v26, %v3517_v18 }
 0x2ad   : > { %v2566_v61 = vadd.f32 %v3461_v56, %v4930_v11 }
 0x2ae   : > { %v4960_v20 = vadd.f32 %v3519_v16, %v2558_v46 }
 0x2b3   : > { %v3462_v10 = vpop.f32.mrb[44].mxu1 }
 0x2b4   : > { %v3520_v21 = vpop.f32.mrb[60].mxu0  ;;  %v3463_v39 = vpop.f32.mrb[45].mxu1 }
 0x2b5   : > { %v3464_v48 = vadd.f32 %v3463_v39, %v3462_v10  ;;  %v3521_v63 = vpop.f32.mrb[61].mxu0  ;;  %v3465_v51 = vpop.f32.mrb[46].mxu1 }
 0x2b6   : > { %v3522_v23 = vadd.f32 %v3521_v63, %v3520_v21  ;;  %v3523_v55 = vpop.f32.mrb[62].mxu0  ;;  %v3466_v30 = vpop.f32.mrb[47].mxu1 }
 0x2b7   : > { %v3467_v28 = vadd.f32 %v3466_v30, %v3465_v51  ;;  %v3524_v35 = vpop.f32.mrb[63].mxu0  ;;  %v2571_v50 = vadd.f32 %v3464_v48, %v4930_v11 }
 0x2b8   : > { %v4964_v60 = vadd.f32 %v3522_v23, %v2563_v25  ;;  %v3525_v53 = vadd.f32 %v3524_v35, %v3523_v55 }
 0x2b9   : > { %v2574_v4 = vadd.f32 %v3467_v28, %v4930_v11 }
 0x2ba   : > { %v4966_v1 = vadd.f32 %v3525_v53, %v2566_v61 }
 0x2bf   : > { %v3468_v5 = vpop.f32.mrb[48].mxu1 }
 0x2c0   : > { %v3526_v9 = vpop.f32.mrb[64].mxu0  ;;  %v3469_v29 = vpop.f32.mrb[49].mxu1 }
 0x2c1   : > { %v3470_v31 = vadd.f32 %v3469_v29, %v3468_v5  ;;  %v3527_v34 = vpop.f32.mrb[65].mxu0  ;;  %v3471_v6 = vpop.f32.mrb[50].mxu1 }
 0x2c2   : > { %v3528_v49 = vadd.f32 %v3527_v34, %v3526_v9  ;;  %v3529_v47 = vpop.f32.mrb[66].mxu0  ;;  %v3472_v43 = vpop.f32.mrb[51].mxu1 }
 0x2c3   : > { %v3473_v36 = vadd.f32 %v3472_v43, %v3471_v6  ;;  %v3530_v24 = vpop.f32.mrb[67].mxu0  ;;  %v2579_v57 = vadd.f32 %v3470_v31, %v4930_v11 }
 0x2c4   : > { %v4970_v38 = vadd.f32 %v3528_v49, %v2571_v50  ;;  %v3531_v3 = vadd.f32 %v3530_v24, %v3529_v47 }
 0x2c5   : > { %v2582_v18 = vadd.f32 %v3473_v36, %v4930_v11 }
 0x2c6   : > { %v4972_v19 = vadd.f32 %v3531_v3, %v2574_v4 }
 0x2c7   : > { %v3554_v40 = vpop.f32.mrb[52].mxu1 }
 0x2c8   : > { %v3555_v27 = vpop.f32.mrb[53].mxu1 }
 0x2c9   : > { %v3556_v13 = vadd.f32 %v3555_v27, %v3554_v40  ;;  %v3557_v17 = vpop.f32.mrb[54].mxu1 }
 0x2ca   : > { %v3558_v22 = vpop.f32.mrb[55].mxu1 }
 0x2cb   : > { %v2717_v54 = vadd.f32 %v3556_v13, %v4934_v12  ;;  %v3559_v37 = vadd.f32 %v3558_v22, %v3557_v17 }
 0x2cc   : > { %v3532_v58 = vpop.f32.mrb[68].mxu0 }
 0x2cd   : > { %v2720_v59 = vadd.f32 %v3559_v37, %v4936_v62  ;;  %v3533_v2 = vpop.f32.mrb[69].mxu0 }
 0x2ce   : > { %v3534_v42 = vadd.f32 %v3533_v2, %v3532_v58  ;;  %v3535_v7 = vpop.f32.mrb[70].mxu0 }
 0x2cf   : > { %v3536_v52 = vpop.f32.mrb[71].mxu0  ;;  %v3560_v8 = vpop.f32.mrb[56].mxu1 }
 0x2d0   : > { %v4978_v33 = vadd.f32 %v3534_v42, %v2579_v57  ;;  %v3537_v56 = vadd.f32 %v3536_v52, %v3535_v7  ;;  %v3561_v26 = vpop.f32.mrb[57].mxu1 }
 0x2d1   : > { %v3562_v46 = vadd.f32 %v3561_v26, %v3560_v8  ;;  %v3563_v16 = vpop.f32.mrb[58].mxu1 }
 0x2d2   : > { %v4980_v12 = vadd.f32 %v3537_v56, %v2582_v18  ;;  %v3564_v10 = vpop.f32.mrb[59].mxu1 }
 0x2d3   : > { %v2725_v62 = vadd.f32 %v3562_v46, %v4940_v14  ;;  %v3565_v21 = vadd.f32 %v3564_v10, %v3563_v16 }
 0x2d4   : > { %v3618_v39 = vpop.f32.mrb[72].mxu0 }
 0x2d5   : > { %v2728_v48 = vadd.f32 %v3565_v21, %v4942_v0  ;;  %v3619_v63 = vpop.f32.mrb[73].mxu0 }
 0x2d6   : > { %v3620_v51 = vadd.f32 %v3619_v63, %v3618_v39  ;;  %v3621_v25 = vpop.f32.mrb[74].mxu0 }
 0x2d7   : > { %v3622_v23 = vpop.f32.mrb[75].mxu0  ;;  %v3566_v11 = vpop.f32.mrb[60].mxu1 }
 0x2d8   : > { %v3623_v55 = vadd.f32 %v3622_v23, %v3621_v25  ;;  %v3567_v30 = vpop.f32.mrb[61].mxu1  ;;  %v4984_v28 = vadd.f32 %v3620_v51, %v2717_v54 }
 0x2d9   : > { %v3568_v35 = vadd.f32 %v3567_v30, %v3566_v11  ;;  %v3569_v61 = vpop.f32.mrb[62].mxu1 }
 0x2da   : > { %v3570_v53 = vpop.f32.mrb[63].mxu1  ;;  %v4986_v5 = vadd.f32 %v3623_v55, %v2720_v59 }
 0x2db   : > { %v2733_v14 = vadd.f32 %v3568_v35, %v4946_v45  ;;  %v3571_v9 = vadd.f32 %v3570_v53, %v3569_v61 }
 0x2dc   : > { %v3624_v29 = vpop.f32.mrb[76].mxu0 }
 0x2dd   : > { %v2736_v0 = vadd.f32 %v3571_v9, %v4948_v32  ;;  %v3625_v31 = vpop.f32.mrb[77].mxu0 }
 0x2de   : > { %v3626_v34 = vadd.f32 %v3625_v31, %v3624_v29  ;;  %v3627_v6 = vpop.f32.mrb[78].mxu0 }
 0x2df   : > { %v3628_v50 = vpop.f32.mrb[79].mxu0  ;;  %v3572_v49 = vpop.f32.mrb[64].mxu1 }
 0x2e0   : > { %v3629_v47 = vadd.f32 %v3628_v50, %v3627_v6  ;;  %v3573_v43 = vpop.f32.mrb[65].mxu1  ;;  %v4990_v36 = vadd.f32 %v3626_v34, %v2725_v62 }
 0x2e1   : > { %v3574_v24 = vadd.f32 %v3573_v43, %v3572_v49  ;;  %v3575_v4 = vpop.f32.mrb[66].mxu1 }
 0x2e2   : > { %v3576_v3 = vpop.f32.mrb[67].mxu1  ;;  %v4992_v40 = vadd.f32 %v3629_v47, %v2728_v48 }
 0x2e3   : > { %v2741_v45 = vadd.f32 %v3574_v24, %v4952_v44  ;;  %v3577_v27 = vadd.f32 %v3576_v3, %v3575_v4 }
 0x2e4   : > { %v3630_v13 = vpop.f32.mrb[80].mxu0 }
 0x2e5   : > { %v2744_v32 = vadd.f32 %v3577_v27, %v4954_v41  ;;  %v3631_v17 = vpop.f32.mrb[81].mxu0 }
 0x2e6   : > { %v3632_v22 = vadd.f32 %v3631_v17, %v3630_v13  ;;  %v3633_v54 = vpop.f32.mrb[82].mxu0 }
 0x2e7   : > { %v3634_v37 = vpop.f32.mrb[83].mxu0  ;;  %v3578_v58 = vpop.f32.mrb[68].mxu1 }
 0x2e8   : > { %v3635_v59 = vadd.f32 %v3634_v37, %v3633_v54  ;;  %v3579_v2 = vpop.f32.mrb[69].mxu1  ;;  %v4996_v57 = vadd.f32 %v3632_v22, %v2733_v14 }
 0x2e9   : > { %v3580_v42 = vadd.f32 %v3579_v2, %v3578_v58  ;;  %v3581_v7 = vpop.f32.mrb[70].mxu1 }
 0x2ea   : > { %v3582_v52 = vpop.f32.mrb[71].mxu1  ;;  %v4998_v8 = vadd.f32 %v3635_v59, %v2736_v0 }
 0x2eb   : > { %v2749_v44 = vadd.f32 %v3580_v42, %v4958_v15  ;;  %v3583_v18 = vadd.f32 %v3582_v52, %v3581_v7 }
 0x2ec   : > { %v3636_v56 = vpop.f32.mrb[84].mxu0 }
 0x2ed   : > { %v2752_v41 = vadd.f32 %v3583_v18, %v4960_v20  ;;  %v3637_v26 = vpop.f32.mrb[85].mxu0 }
 0x2ee   : > { %v3638_v46 = vadd.f32 %v3637_v26, %v3636_v56  ;;  %v3639_v16 = vpop.f32.mrb[86].mxu0 }
 0x2ef   : > { %v3640_v10 = vpop.f32.mrb[87].mxu0  ;;  %v3584_v62 = vpop.f32.mrb[72].mxu1 }
 0x2f0   : > { %v3641_v21 = vadd.f32 %v3640_v10, %v3639_v16  ;;  %v3585_v39 = vpop.f32.mrb[73].mxu1  ;;  %v5002_v48 = vadd.f32 %v3638_v46, %v2741_v45 }
 0x2f1   : > { %v3586_v63 = vadd.f32 %v3585_v39, %v3584_v62  ;;  %v3587_v51 = vpop.f32.mrb[74].mxu1 }
 0x2f2   : > { %v3588_v25 = vpop.f32.mrb[75].mxu1  ;;  %v5004_v23 = vadd.f32 %v3641_v21, %v2744_v32 }
 0x2f3   : > { %v2757_v15 = vadd.f32 %v3586_v63, %v4964_v60  ;;  %v3589_v11 = vadd.f32 %v3588_v25, %v3587_v51 }
 0x2f4   : > { %v3642_v55 = vpop.f32.mrb[88].mxu0 }
 0x2f5   : > { %v2760_v20 = vadd.f32 %v3589_v11, %v4966_v1  ;;  %v3643_v30 = vpop.f32.mrb[89].mxu0 }
 0x2f6   : > { %v3644_v35 = vadd.f32 %v3643_v30, %v3642_v55  ;;  %v3645_v61 = vpop.f32.mrb[90].mxu0 }
 0x2f7   : > { %v3646_v53 = vpop.f32.mrb[91].mxu0  ;;  %v3590_v14 = vpop.f32.mrb[76].mxu1 }
 0x2f8   : > { %v3647_v9 = vadd.f32 %v3646_v53, %v3645_v61  ;;  %v3591_v29 = vpop.f32.mrb[77].mxu1  ;;  %v5009_v0 = vadd.f32 %v3644_v35, %v2749_v44 }
 0x2f9   : > { %v3592_v31 = vadd.f32 %v3591_v29, %v3590_v14  ;;  %v3593_v34 = vpop.f32.mrb[78].mxu1 }
 0x2fa   : > { %v3594_v6 = vpop.f32.mrb[79].mxu1  ;;  %v5011_v60 = vadd.f32 %v3647_v9, %v2752_v41 }
 0x2fb   : > { %v2765_v50 = vadd.f32 %v3592_v31, %v4970_v38  ;;  %v3595_v1 = vadd.f32 %v3594_v6, %v3593_v34 }
 0x2fc   : > { %v3648_v49 = vpop.f32.mrb[92].mxu0 }
 0x2fd   : > { %v2768_v47 = vadd.f32 %v3595_v1, %v4972_v19  ;;  %v3649_v43 = vpop.f32.mrb[93].mxu0 }
 0x2fe   : > { %v3650_v24 = vadd.f32 %v3649_v43, %v3648_v49  ;;  %v3651_v4 = vpop.f32.mrb[94].mxu0 }
 0x2ff   : > { %v3652_v3 = vpop.f32.mrb[95].mxu0  ;;  %v3596_v45 = vpop.f32.mrb[80].mxu1 }
 0x300   : > { %v3653_v27 = vadd.f32 %v3652_v3, %v3651_v4  ;;  %v3597_v13 = vpop.f32.mrb[81].mxu1  ;;  %v2854_v32 = vadd.f32 %v3650_v24, %v2757_v15 }
 0x301   : > { %v3598_v17 = vadd.f32 %v3597_v13, %v3596_v45  ;;  %v3599_v22 = vpop.f32.mrb[82].mxu1 }
 0x302   : > { %v3600_v54 = vpop.f32.mrb[83].mxu1  ;;  %v2857_v37 = vadd.f32 %v3653_v27, %v2760_v20 }
 0x303   : > { %v2773_v38 = vadd.f32 %v3598_v17, %v4978_v33  ;;  %v3601_v58 = vadd.f32 %v3600_v54, %v3599_v22 }
 0x304   : > { %v3654_v59 = vpop.f32.mrb[96].mxu0 }
 0x305   : > { %v2776_v19 = vadd.f32 %v3601_v58, %v4980_v12  ;;  %v3655_v2 = vpop.f32.mrb[97].mxu0 }
 0x306   : > { %v3656_v42 = vadd.f32 %v3655_v2, %v3654_v59  ;;  %v3657_v7 = vpop.f32.mrb[98].mxu0 }
 0x307   : > { %v3658_v52 = vpop.f32.mrb[99].mxu0  ;;  %v3724_v44 = vpop.f32.mrb[84].mxu1 }
 0x308   : > { %v3659_v33 = vadd.f32 %v3658_v52, %v3657_v7  ;;  %v2919_v18 = vadd.f32 %v3724_v44, %v4990_v36  ;;  %v2910_v56 = vpop.f32.mrb[85].mxu1  ;;  %v2862_v41 = vadd.f32 %v3656_v42, %v2765_v50 }
 0x309   : > { %v2911_v12 = vadd.f32 %v2910_v56, %v4984_v28  ;;  %v3725_v26 = vpop.f32.mrb[86].mxu1 }
 0x30a   : > { %2975 = vst.msk [vmem:[%s5021_s30 + $0x10] sm:$0xff] %vm708_vm0, %v2919_v18  ;;  %v2922_v46 = vadd.f32 %v3725_v26, %v4992_v40  ;;  %v2913_v16 = vpop.f32.mrb[87].mxu1  ;;  %v2865_v10 = vadd.f32 %v3659_v33, %v2768_v47 }
 0x30b   : > { %2973 = vst.msk [vmem:[%s5021_s30] sm:$0xff] %vm708_vm0, %v2911_v12  ;;  %v2914_v62 = vadd.f32 %v2913_v16, %v4986_v5 }
 0x30c   : > { %2976 = vst.msk [vmem:[%s5021_s30 + $0x18] sm:$0xff] %vm708_vm0, %v2922_v46  ;;  %v3660_v21 = vpop.f32.mrb[100].mxu0 }
 0x30d   : > { %2974 = vst.msk [vmem:[%s5021_s30 + $0x8] sm:$0xff] %vm708_vm0, %v2914_v62  ;;  %v3661_v36 = vpop.f32.mrb[101].mxu0 }
 0x30e   : > { %v3662_v28 = vadd.f32 %v3661_v36, %v3660_v21  ;;  %v3663_v39 = vpop.f32.mrb[102].mxu0 }
 0x30f   : > { %v3664_v63 = vpop.f32.mrb[103].mxu0  ;;  %v3728_v40 = vpop.f32.mrb[88].mxu1 }
 0x310   : > { %v3665_v51 = vadd.f32 %v3664_v63, %v3663_v39  ;;  %v2935_v25 = vadd.f32 %v3728_v40, %v5002_v48  ;;  %v2926_v15 = vpop.f32.mrb[89].mxu1  ;;  %v2870_v11 = vadd.f32 %v3662_v28, %v2773_v38 }
 0x311   : > { %v2927_v5 = vadd.f32 %v2926_v15, %v4996_v57  ;;  %v3729_v55 = vpop.f32.mrb[90].mxu1 }
 0x312   : > { %2979 = vst.msk [vmem:[%s5021_s30 + $0x30] sm:$0xff] %vm708_vm0, %v2935_v25  ;;  %v2938_v20 = vadd.f32 %v3729_v55, %v5004_v23  ;;  %v2929_v30 = vpop.f32.mrb[91].mxu1  ;;  %v2873_v35 = vadd.f32 %v3665_v51, %v2776_v19 }
 0x313   : > { %2977 = vst.msk [vmem:[%s5021_s30 + $0x20] sm:$0xff] %vm708_vm0, %v2927_v5  ;;  %v2930_v61 = vadd.f32 %v2929_v30, %v4998_v8 }
 0x314   : > { %2980 = vst.msk [vmem:[%s5021_s30 + $0x38] sm:$0xff] %vm708_vm0, %v2938_v20 }
 0x315   : > { %2978 = vst.msk [vmem:[%s5021_s30 + $0x28] sm:$0xff] %vm708_vm0, %v2930_v61 }
 0x317   : > { %v3732_v48 = vpop.f32.mrb[92].mxu1 }
 0x318   : > { %v2951_v57 = vadd.f32 %v3732_v48, %v2854_v32  ;;  %v2942_v53 = vpop.f32.mrb[93].mxu1 }
 0x319   : > { %v2943_v14 = vadd.f32 %v2942_v53, %v5009_v0  ;;  %v3733_v9 = vpop.f32.mrb[94].mxu1 }
 0x31a   : > { %2983 = vst.msk [vmem:[%s5021_s30 + $0x50] sm:$0xff] %vm708_vm0, %v2951_v57  ;;  %v2954_v23 = vadd.f32 %v3733_v9, %v2857_v37  ;;  %v2945_v29 = vpop.f32.mrb[95].mxu1 }
 0x31b   : > { %2981 = vst.msk [vmem:[%s5021_s30 + $0x40] sm:$0xff] %vm708_vm0, %v2943_v14  ;;  %v2946_v8 = vadd.f32 %v2945_v29, %v5011_v60 }
 0x31c   : > { %2984 = vst.msk [vmem:[%s5021_s30 + $0x58] sm:$0xff] %vm708_vm0, %v2954_v23 }
 0x31d   : > { %2982 = vst.msk [vmem:[%s5021_s30 + $0x48] sm:$0xff] %vm708_vm0, %v2946_v8 }
 0x31f   : > { %v3736_v31 = vpop.f32.mrb[96].mxu1 }
 0x320   : > { %v2967_v34 = vadd.f32 %v3736_v31, %v2870_v11  ;;  %v2958_v6 = vpop.f32.mrb[97].mxu1 }
 0x321   : > { %v2959_v0 = vadd.f32 %v2958_v6, %v2862_v41  ;;  %v3737_v50 = vpop.f32.mrb[98].mxu1 }
 0x322   : > { %2987 = vst.msk [vmem:[%s5021_s30 + $0x70] sm:$0xff] %vm708_vm0, %v2967_v34  ;;  %v2970_v1 = vadd.f32 %v3737_v50, %v2873_v35  ;;  %v2961_v49 = vpop.f32.mrb[99].mxu1 }
 0x323   : > { %2985 = vst.msk [vmem:[%s5021_s30 + $0x60] sm:$0xff] %vm708_vm0, %v2959_v0  ;;  %v2962_v47 = vadd.f32 %v2961_v49, %v2865_v10 }
 0x324   : > { %2988 = vst.msk [vmem:[%s5021_s30 + $0x78] sm:$0xff] %vm708_vm0, %v2970_v1 }
 0x325   : > { %2986 = vst.msk [vmem:[%s5021_s30 + $0x68] sm:$0xff] %vm708_vm0, %v2962_v47 }
 0x326 PF: > { %s15_s22 = sadd.s32 1, %s3957_s22   ;;  %s5090_s18 = smov %s3949_s20 }
 0x327   : > { %p12_p9 = scmp.ge.s32.totalorder %s15_s22, 6   ;;  %s5091_s19 = smov %s3953_s21 }
 0x328   : > { %s5092_s20 = smov %s5095_s23  ;;  %s5093_s21 = smov %s5099_s24 }
 0x329   :  { %14 = sbr.rel (!%p12_p9) target bundleno = 3 (0x3), region = 75 }

</bundles_post_ra>
